<compile_context>
chip_gen: v7x
topology: tpu7x:2x2x1
jax: 0.10.0
libtpu: 0.0.40
codegen_flags: <defaults>
</compile_context>

<pallas_src>
import functools
import math

import jax
import jax.numpy as jnp
from jax import lax
from jax.experimental import pallas as pl
from jax.experimental.pallas import tpu as pltpu


def _gelu_exact(x):
    # PyTorch nn.GELU() default: exact erf-based GELU (f32 math).
    return 0.5 * x * (1.0 + lax.erf(x * (1.0 / math.sqrt(2.0))))


def _round_up(n, m):
    return ((n + m - 1) // m) * m


# ---------------------------------------------------------------------------
# Path 1: both weight matrices fully resident in VMEM (small / medium F).
# ---------------------------------------------------------------------------
def _resident_kernel(x_ref, w1_ref, b1_ref, w2_ref, b2_ref, o_ref):
    x = x_ref[...]                                       # (TB, F) f32
    xb = x.astype(jnp.bfloat16)
    h = jnp.dot(xb, w1_ref[...], preferred_element_type=jnp.float32)
    h = _gelu_exact(h + b1_ref[...])
    y = jnp.dot(h.astype(jnp.bfloat16), w2_ref[...],
                preferred_element_type=jnp.float32) + b2_ref[...]
    # Dropout(p=0.3) in eval mode == identity; residual add in f32.
    o_ref[...] = (x + y).astype(o_ref.dtype)


# ---------------------------------------------------------------------------
# Path 2: H-tiled fallback (large F / v7x): stream W1[:, h-tile], W2[h-tile, :]
# and accumulate the second matmul in an f32 VMEM scratch.
# ---------------------------------------------------------------------------
def _htiled_kernel(x_ref, w1_ref, b1_ref, w2_ref, b2_ref, o_ref, acc_ref):
    j = pl.program_id(1)

    @pl.when(j == 0)
    def _():
        acc_ref[...] = jnp.zeros_like(acc_ref)

    x = x_ref[...]
    xb = x.astype(jnp.bfloat16)
    h = jnp.dot(xb, w1_ref[...], preferred_element_type=jnp.float32)
    h = _gelu_exact(h + b1_ref[...])
    acc_ref[...] += jnp.dot(h.astype(jnp.bfloat16), w2_ref[...],
                            preferred_element_type=jnp.float32)

    @pl.when(j == pl.num_programs(1) - 1)
    def _():
        o_ref[...] = (x + acc_ref[...] + b2_ref[...]).astype(o_ref.dtype)


# Keep weights resident only while both bf16 matrices fit comfortably in VMEM
# on every chip generation (v7x has 64 MiB physical VMEM).
_RESIDENT_WEIGHT_BYTES = 24 * 1024 * 1024


@functools.partial(jax.jit, static_argnames=("block_b", "block_h"))
def residual_block(x, w1, b1, w2, b2, *, block_b=256, block_h=None):
    """x: (B, F); w1: (F, 4F); b1: (4F,); w2: (4F, F); b2: (F,)."""
    B, F = x.shape
    H = w1.shape[1]

    # bf16 weights for the MXU fast path (half the VMEM / HBM traffic);
    # accumulation is f32.
    w1b = w1.astype(jnp.bfloat16)
    w2b = w2.astype(jnp.bfloat16)
    b1f = b1.astype(jnp.float32).reshape(1, H)
    b2f = b2.astype(jnp.float32).reshape(1, F)

    # Batch tiling: large tiles amortize resident weights; pad ragged batches.
    bb = max(8, min(_round_up(block_b, 8), _round_up(B, 8)))
    B_pad = _round_up(B, bb)
    x_p = jnp.pad(x, ((0, B_pad - B), (0, 0))) if B_pad != B else x
    grid_b = B_pad // bb

    weight_bytes = 2 * F * H + 2 * H * F  # bf16, both matrices
    use_resident = block_h is None and weight_bytes <= _RESIDENT_WEIGHT_BYTES

    cost = pl.CostEstimate(
        flops=4 * B_pad * F * H,                 # two matmuls, 2*B*F*H each
        transcendentals=B_pad * H,               # one erf per hidden element
        bytes_accessed=(x_p.size * 4 + B_pad * F * 4
                        + weight_bytes + 4 * (H + F)),
    )

    if use_resident:
        vmem_bytes = (
            weight_bytes                 # bf16 weights, single-buffered
            + 4 * (H + F)                # biases (f32)
            + 2 * 2 * bb * F * 4         # x / out tiles, double-buffered
            + bb * H * 6                 # h intermediate (f32 + bf16 copy)
            + (8 << 20)                  # headroom
        )
        vmem_limit = int(min(max(vmem_bytes, 32 << 20), 64 << 20))
        fn = pl.pallas_call(
            _resident_kernel,
            out_shape=jax.ShapeDtypeStruct((B_pad, F), x.dtype),
            grid_spec=pltpu.PrefetchScalarGridSpec(
                num_scalar_prefetch=0,
                grid=(grid_b,),
                in_specs=[
                    pl.BlockSpec((bb, F), lambda i: (i, 0)),        # x tile
                    pl.BlockSpec((F, H), lambda i: (0, 0),          # W1 resident
                                 pipeline_mode=pl.Buffered(1)),
                    pl.BlockSpec((1, H), lambda i: (0, 0),          # b1
                                 pipeline_mode=pl.Buffered(1)),
                    pl.BlockSpec((H, F), lambda i: (0, 0),          # W2 resident
                                 pipeline_mode=pl.Buffered(1)),
                    pl.BlockSpec((1, F), lambda i: (0, 0),          # b2
                                 pipeline_mode=pl.Buffered(1)),
                ],
                out_specs=pl.BlockSpec((bb, F), lambda i: (i, 0)),
            ),
            compiler_params=pltpu.CompilerParams(
                dimension_semantics=("parallel",),
                vmem_limit_bytes=vmem_limit,
            ),
            cost_estimate=cost,
        )
        out = fn(x_p, w1b, b1f, w2b, b2f)
    else:
        th = block_h
        if th is None:  # H = 4F is a multiple of 512 for any F reaching here
            th = next((t for t in (512, 256, 128) if H % t == 0), H)
        grid_h = H // th
        vmem_bytes = (
            2 * (2 * F * th) * 2         # W1 / W2 tiles (bf16), double-buffered
            + 2 * 4 * th + 4 * F         # b1 (double-buffered) + b2
            + 2 * 2 * bb * F * 4         # x / out tiles, double-buffered
            + bb * F * 4                 # f32 accumulator scratch
            + bb * th * 6                # h intermediate (f32 + bf16 copy)
            + (8 << 20)                  # headroom
        )
        vmem_limit = int(min(max(vmem_bytes, 32 << 20), 64 << 20))
        fn = pl.pallas_call(
            _htiled_kernel,
            out_shape=jax.ShapeDtypeStruct((B_pad, F), x.dtype),
            grid_spec=pltpu.PrefetchScalarGridSpec(
                num_scalar_prefetch=0,
                grid=(grid_b, grid_h),
                in_specs=[
                    pl.BlockSpec((bb, F), lambda i, j: (i, 0)),     # x tile
                    pl.BlockSpec((F, th), lambda i, j: (0, j)),     # W1 col tile
                    pl.BlockSpec((1, th), lambda i, j: (0, j)),     # b1 tile
                    pl.BlockSpec((th, F), lambda i, j: (j, 0)),     # W2 row tile
                    pl.BlockSpec((1, F), lambda i, j: (0, 0),       # b2
                                 pipeline_mode=pl.Buffered(1)),
                ],
                out_specs=pl.BlockSpec((bb, F), lambda i, j: (i, 0)),
                scratch_shapes=[pltpu.VMEM((bb, F), jnp.float32)],
            ),
            compiler_params=pltpu.CompilerParams(
                dimension_semantics=("parallel", "arbitrary"),
                vmem_limit_bytes=vmem_limit,
            ),
            cost_estimate=cost,
        )
        out = fn(x_p, w1b, b1f, w2b, b2f)

    return out[:B] if B_pad != B else out


# ---------------------------------------------------------------------------
# Pure-JAX reference (f32) and PyTorch-style init.
# ---------------------------------------------------------------------------
def reference(x, w1, b1, w2, b2):
    h = _gelu_exact(x @ w1 + b1.reshape(1, -1))
    y = h @ w2 + b2.reshape(1, -1)
    return x + y


def init_params(key, features):
    hidden = features * 4
    k1, k2, k3, k4 = jax.random.split(key, 4)
    bound1 = 1.0 / math.sqrt(features)
    bound2 = 1.0 / math.sqrt(hidden)
    w1 = jax.random.uniform(k1, (features, hidden), jnp.float32, -bound1, bound1)
    b1 = jax.random.uniform(k2, (hidden,), jnp.float32, -bound1, bound1)
    w2 = jax.random.uniform(k3, (hidden, features), jnp.float32, -bound2, bound2)
    b2 = jax.random.uniform(k4, (features,), jnp.float32, -bound2, bound2)
    return w1, b1, w2, b2


if __name__ == "__main__":
    key = jax.random.PRNGKey(0)
    kx, kp = jax.random.split(key)

    # F is a multiple of 128 (lane-dense stores); ragged batch exercises the
    # padding path and gives a grid of 2 (megacore-shardable on v7x).
    batch, features = 200, 128            # hidden = 512
    x = jax.random.normal(kx, (batch, features), jnp.float32)
    w1, b1, w2, b2 = init_params(kp, features)

    ref = reference(x, w1, b1, w2, b2)

    # Resident-weight path.
    out = jax.block_until_ready(residual_block(x, w1, b1, w2, b2, block_b=128))
    assert out.shape == (batch, features)
    # bf16 matmul inputs (f32 accumulation) => loose tolerance vs f32 reference.
    assert jnp.allclose(out, ref, atol=5e-2, rtol=5e-2), "resident path mismatch"

    # H-tiled large-F fallback, forced at small shapes to validate it.
    out2 = jax.block_until_ready(
        residual_block(x, w1, b1, w2, b2, block_b=128, block_h=128))
    assert out2.shape == (batch, features)
    assert jnp.allclose(out2, ref, atol=5e-2, rtol=5e-2), "H-tiled path mismatch"

    print("KERNEL_OK")
</pallas_src>

<mosaic_0001>
module attributes {stable_mosaic.version = 11 : i64} {
  func.func @_resident_kernel(%arg0: i32, %arg1: memref<128x128xf32, #tpu.memory_space<vmem>>, %arg2: memref<128x512xbf16, #tpu.memory_space<vmem>>, %arg3: memref<1x512xf32, #tpu.memory_space<vmem>>, %arg4: memref<512x128xbf16, #tpu.memory_space<vmem>>, %arg5: memref<1x128xf32, #tpu.memory_space<vmem>>, %arg6: memref<128x128xf32, #tpu.memory_space<vmem>>) attributes {dimension_semantics = [#tpu.dimension_semantics<parallel>], iteration_bounds = array<i64: 2>, scalar_prefetch = 0 : i64, scratch_operands = 0 : i64, tpu.core_type = #tpu.core_type<tc>, window_params = [{transform_indices = @transform_0, window_bounds = array<i64: 128, 128>}, {pipeline_mode = #tpu.pipeline_mode<synchronous>, transform_indices = @transform_1, window_bounds = array<i64: 128, 512>}, {pipeline_mode = #tpu.pipeline_mode<synchronous>, transform_indices = @transform_2, window_bounds = array<i64: 1, 512>}, {pipeline_mode = #tpu.pipeline_mode<synchronous>, transform_indices = @transform_3, window_bounds = array<i64: 512, 128>}, {pipeline_mode = #tpu.pipeline_mode<synchronous>, transform_indices = @transform_4, window_bounds = array<i64: 1, 128>}, {transform_indices = @transform_5, window_bounds = array<i64: 128, 128>}]} {
    %c0 = arith.constant 0 : index
    %c0_0 = arith.constant 0 : index
    %0 = vector.load %arg1[%c0, %c0_0] : memref<128x128xf32, #tpu.memory_space<vmem>>, vector<128x128xf32>
    %1 = arith.truncf %0 : vector<128x128xf32> to vector<128x128xbf16>
    %c0_1 = arith.constant 0 : index
    %c0_2 = arith.constant 0 : index
    %2 = vector.load %arg2[%c0_1, %c0_2] : memref<128x512xbf16, #tpu.memory_space<vmem>>, vector<128x512xbf16>
    %cst = arith.constant dense<0.000000e+00> : vector<128x512xf32>
    %3 = tpu.matmul %1, %2, %cst {dimension_numbers = #tpu.dot_dimension_numbers<[1], [0], [0], [1], [0, 0, 1, 1], [], []>} : vector<128x128xbf16>, vector<128x512xbf16>, vector<128x512xf32> -> vector<128x512xf32>
    %c0_3 = arith.constant 0 : index
    %c0_4 = arith.constant 0 : index
    %4 = vector.load %arg3[%c0_3, %c0_4] : memref<1x512xf32, #tpu.memory_space<vmem>>, vector<1x512xf32>
    %5 = vector.broadcast %4 : vector<1x512xf32> to vector<128x512xf32>
    %6 = arith.addf %3, %5 : vector<128x512xf32>
    %cst_5 = arith.constant 5.000000e-01 : f32
    %7 = vector.broadcast %cst_5 : f32 to vector<128x512xf32>
    %8 = arith.mulf %7, %6 : vector<128x512xf32>
    %cst_6 = arith.constant 0.707106769 : f32
    %9 = vector.broadcast %cst_6 : f32 to vector<128x512xf32>
    %10 = arith.mulf %6, %9 : vector<128x512xf32>
    %11 = math.erf %10 : vector<128x512xf32>
    %cst_7 = arith.constant 1.000000e+00 : f32
    %12 = vector.broadcast %cst_7 : f32 to vector<128x512xf32>
    %13 = arith.addf %12, %11 : vector<128x512xf32>
    %14 = arith.mulf %8, %13 : vector<128x512xf32>
    %15 = arith.truncf %14 : vector<128x512xf32> to vector<128x512xbf16>
    %c0_8 = arith.constant 0 : index
    %c0_9 = arith.constant 0 : index
    %16 = vector.load %arg4[%c0_8, %c0_9] : memref<512x128xbf16, #tpu.memory_space<vmem>>, vector<512x128xbf16>
    %cst_10 = arith.constant dense<0.000000e+00> : vector<128x128xf32>
    %17 = tpu.matmul %15, %16, %cst_10 {dimension_numbers = #tpu.dot_dimension_numbers<[1], [0], [0], [1], [0, 0, 1, 1], [], []>} : vector<128x512xbf16>, vector<512x128xbf16>, vector<128x128xf32> -> vector<128x128xf32>
    %c0_11 = arith.constant 0 : index
    %c0_12 = arith.constant 0 : index
    %18 = vector.load %arg5[%c0_11, %c0_12] : memref<1x128xf32, #tpu.memory_space<vmem>>, vector<1x128xf32>
    %19 = vector.broadcast %18 : vector<1x128xf32> to vector<128x128xf32>
    %20 = arith.addf %17, %19 : vector<128x128xf32>
    %21 = arith.addf %0, %20 : vector<128x128xf32>
    %c0_13 = arith.constant 0 : index
    %c0_14 = arith.constant 0 : index
    %22 = vector.load %arg6[%c0_13, %c0_14] : memref<128x128xf32, #tpu.memory_space<vmem>>, vector<128x128xf32>
    tpu.vector_store %arg6[%c0_13, %c0_14], %21 {strides = array<i32>} : memref<128x128xf32, #tpu.memory_space<vmem>>, vector<128x128xf32>,
    return
  }
  func.func @transform_0(%arg0: i32) -> (i32, i32) {
    %c0_i32 = arith.constant 0 : i32
    %c0_i32_0 = arith.constant 0 : i32
    return %arg0, %c0_i32 : i32, i32
  }
  func.func @transform_1(%arg0: i32) -> (i32, i32) {
    %c0_i32 = arith.constant 0 : i32
    %c0_i32_0 = arith.constant 0 : i32
    %c0_i32_1 = arith.constant 0 : i32
    return %c0_i32, %c0_i32_0 : i32, i32
  }
  func.func @transform_2(%arg0: i32) -> (i32, i32) {
    %c0_i32 = arith.constant 0 : i32
    %c0_i32_0 = arith.constant 0 : i32
    %c0_i32_1 = arith.constant 0 : i32
    return %c0_i32, %c0_i32_0 : i32, i32
  }
  func.func @transform_3(%arg0: i32) -> (i32, i32) {
    %c0_i32 = arith.constant 0 : i32
    %c0_i32_0 = arith.constant 0 : i32
    %c0_i32_1 = arith.constant 0 : i32
    return %c0_i32, %c0_i32_0 : i32, i32
  }
  func.func @transform_4(%arg0: i32) -> (i32, i32) {
    %c0_i32 = arith.constant 0 : i32
    %c0_i32_0 = arith.constant 0 : i32
    %c0_i32_1 = arith.constant 0 : i32
    return %c0_i32, %c0_i32_0 : i32, i32
  }
  func.func @transform_5(%arg0: i32) -> (i32, i32) {
    %c0_i32 = arith.constant 0 : i32
    %c0_i32_0 = arith.constant 0 : i32
    return %arg0, %c0_i32 : i32, i32
  }
}

</mosaic_0001>

<bundles_post_ra>
// kernel: residual_block.1
= control target key start
LH: loop header
LB: loop body
LE: loop exit
PB: predicated region body
PF: predicated region fallthrough
CT: control target
= control target key end

     0   :  { %s2066_s18 = smov 0   ;;  %s2870_s0 = inlined_call_operand.vmem [shape: f32[256,128], index: 0, kind: input, shape index: {}]   ;;  %s2871_s1 = inlined_call_operand.vmem [shape: bf16[128,512], index: 1, kind: input, shape index: {}]   ;;  %s2872_s2 = inlined_call_operand.vmem [shape: f32[1,512], index: 2, kind: input, shape index: {}]   ;;  %s2873_s3 = inlined_call_operand.vmem [shape: bf16[512,128], index: 3, kind: input, shape index: {}]   ;;  %s2874_s4 = inlined_call_operand.vmem [shape: f32[1,128], index: 4, kind: input, shape index: {}]   ;;  %s2875_s5 = inlined_call_operand.vmem [shape: f32[256,128], index: 5, kind: output, shape index: {}]  }
   0x1 LB: > { %s1590_s19 = sadd.s32 4294967295, %s2033_s18   ;;  %p1594_p0 = scmp.ge.s32.totalorder %s2033_s18, 1  ;;  %s2033_s18 = sphi %s2066_s18, %s15_s18  }
   0x2   : > { %p188_p1 = scmp.lt.s32.totalorder %s2033_s18, 3 }
   0x4   : > { %p189_p2 = pnand %p1594_p0, %p188_p1 }
   0x6   : > { %192 = sbr.rel (%p189_p2) target bundleno = 599 (0x257), region = 40 }
   0xd   : > { %v1803_v0 = vld [vmem:[%s2871_s1 + $0x4] ss:$16 sps:$4 sm:$0xff]   ;;  %v1805_v1 = vld [vmem:[%s2871_s1 + $0xc] ss:$16 sps:$4 sm:$0xff]   ;;  %v2035_v2 = vmov 0   ;;  %s1595_s25 = sshll.u32 %s1590_s19, 4 }
   0xe   : > { %499 = vmatprep.mubr.bf16.mxu0 %v2035_v2  ;;  %612 = vmatprep.mubr.bf16.mxu1 %v2035_v2  ;;  %v1807_v3 = vld [vmem:[%s2871_s1] ss:$16 sps:$4 sm:$0xff]   ;;  %v1808_v4 = vld [vmem:[%s2871_s1 + $0x8] ss:$16 sps:$4 sm:$0xff]   ;;  %v1809_v5 = vld [vmem:[%s2871_s1 + $0x24] ss:$16 sps:$4 sm:$0xff]  }
   0xf   : > { %467 = vmatprep.subr.bf16.mxu0 %v1803_v0  ;;  %580 = vmatprep.subr.bf16.mxu1 %v1805_v1  ;;  %v1811_v6 = vld [vmem:[%s2871_s1 + $0x2c] ss:$16 sps:$4 sm:$0xff]   ;;  %v1813_v7 = vld [vmem:[%s2871_s1 + $0x20] ss:$16 sps:$4 sm:$0xff]   ;;  %v1814_v8 = vld [vmem:[%s2871_s1 + $0x28] ss:$16 sps:$4 sm:$0xff]  }
  0x10   : > { %468 = vmatpush1.bf16.msra.mxu0 %v1807_v3  ;;  %581 = vmatpush1.bf16.msra.mxu1 %v1808_v4  ;;  %v1815_v9 = vld [vmem:[%s2871_s1 + $0x44] ss:$16 sps:$4 sm:$0xff]   ;;  %v1817_v10 = vld [vmem:[%s2871_s1 + $0x4c] ss:$16 sps:$4 sm:$0xff]   ;;  %v1819_v11 = vld [vmem:[%s2871_s1 + $0x40] ss:$16 sps:$4 sm:$0xff]  }
  0x11   : > { %469 = vmatprep.subr.bf16.mxu0 %v1809_v5  ;;  %582 = vmatprep.subr.bf16.mxu1 %v1811_v6  ;;  %v1820_v12 = vld [vmem:[%s2871_s1 + $0x48] ss:$16 sps:$4 sm:$0xff]   ;;  %v1821_v13 = vld [vmem:[%s2871_s1 + $0x64] ss:$16 sps:$4 sm:$0xff]   ;;  %v1823_v14 = vld [vmem:[%s2871_s1 + $0x6c] ss:$16 sps:$4 sm:$0xff]  }
  0x12   : > { %v1825_v15 = vld [vmem:[%s2871_s1 + $0x60] ss:$16 sps:$4 sm:$0xff]   ;;  %v1826_v16 = vld [vmem:[%s2871_s1 + $0x68] ss:$16 sps:$4 sm:$0xff]   ;;  %v1827_v17 = vld [vmem:[%s2871_s1 + $0x84] ss:$16 sps:$4 sm:$0xff]  }
  0x13   : > { %p217_p3 = scmp.lt.s32.totalorder %s1595_s25, 31  ;;  %v1829_v18 = vld [vmem:[%s2871_s1 + $0x8c] ss:$16 sps:$4 sm:$0xff]   ;;  %v1831_v19 = vld [vmem:[%s2871_s1 + $0x80] ss:$16 sps:$4 sm:$0xff]  }
  0x14   : > { %470 = vmatpush1.bf16.msra.mxu0 %v1813_v7  ;;  %583 = vmatpush1.bf16.msra.mxu1 %v1814_v8  ;;  %v1832_v20 = vld [vmem:[%s2871_s1 + $0x88] ss:$16 sps:$4 sm:$0xff]   ;;  %v1833_v21 = vld [vmem:[%s2871_s1 + $0xa4] ss:$16 sps:$4 sm:$0xff]   ;;  %v1835_v22 = vld [vmem:[%s2871_s1 + $0xac] ss:$16 sps:$4 sm:$0xff]  }
  0x15   : > { %471 = vmatprep.subr.bf16.mxu0 %v1815_v9  ;;  %584 = vmatprep.subr.bf16.mxu1 %v1817_v10  ;;  %s2887_s25 = smov (!%p217_p3, %s1595_s25), 31  ;;  %v1837_v23 = vld [vmem:[%s2871_s1 + $0xa0] ss:$16 sps:$4 sm:$0xff]   ;;  %v1838_v24 = vld [vmem:[%s2871_s1 + $0xa8] ss:$16 sps:$4 sm:$0xff]  }
  0x16   : > { %s1596_s22 = sshll.u32 %s2887_s25, 3  ;;  %v1839_v25 = vld [vmem:[%s2871_s1 + $0xc4] ss:$16 sps:$4 sm:$0xff]   ;;  %v1841_v26 = vld [vmem:[%s2871_s1 + $0xcc] ss:$16 sps:$4 sm:$0xff]  }
  0x17   : > { %s2164_s30 = scalar_lea.vmem %s2870_s0, %s1596_s22  ;;  %v1843_v27 = vld [vmem:[%s2871_s1 + $0xc0] ss:$16 sps:$4 sm:$0xff]   ;;  %v1844_v28 = vld [vmem:[%s2871_s1 + $0xc8] ss:$16 sps:$4 sm:$0xff]   ;;  %v1845_v29 = vld [vmem:[%s2871_s1 + $0xe4] ss:$16 sps:$4 sm:$0xff]   ;;  %s2819_s28 = scalar_lea.vmem %s2875_s5, %s1596_s22 }
  0x18   : > { %472 = vmatpush1.bf16.msra.mxu0 %v1819_v11  ;;  %585 = vmatpush1.bf16.msra.mxu1 %v1820_v12  ;;  %v1847_v30 = vld [vmem:[%s2871_s1 + $0xec] ss:$16 sps:$4 sm:$0xff]   ;;  %v1849_v31 = vld [vmem:[%s2871_s1 + $0xe0] ss:$16 sps:$4 sm:$0xff]   ;;  %v1850_v32 = vld [vmem:[%s2871_s1 + $0xe8] ss:$16 sps:$4 sm:$0xff]  }
  0x19   : > { %473 = vmatprep.subr.bf16.mxu0 %v1821_v13  ;;  %586 = vmatprep.subr.bf16.mxu1 %v1823_v14  ;;  %v229_v33 = vld [vmem:[%s2164_s30] sm:$0xff]  ;;  %v230_v34 = vld [vmem:[%s2164_s30 + $0x8] sm:$0xff]  ;;  %v231_v41 = vld [vmem:[%s2164_s30 + $0x10] sm:$0xff] }
  0x1a   : > { %v1851_v35 = vld [vmem:[%s2873_s3 + $0x40] sm:$0xff]   ;;  %v245_v37 = vpack.c.bf16 %v230_v34, %v229_v33  ;;  %v1855_v40 = vld [vmem:[%s2873_s3 + $0x48] sm:$0xff]   ;;  %v232_v42 = vld [vmem:[%s2164_s30 + $0x18] sm:$0xff] }
  0x1b   : > { %v1853_v36 = vld [vmem:[%s2873_s3 + $0xc0] sm:$0xff]   ;;  %v1857_v43 = vld [vmem:[%s2873_s3 + $0xc8] sm:$0xff]   ;;  %v1859_v46 = vld [vmem:[%s2873_s3 + $0x50] sm:$0xff]   ;;  %v246_v48 = vpack.c.bf16 %v232_v42, %v231_v41 }
  0x1c   : > { %474 = vmatpush1.bf16.msra.mxu0 %v1825_v15  ;;  %587 = vmatpush1.bf16.msra.mxu1 %v1826_v16  ;;  %v1852_v38 = vld [vmem:[%s2873_s3] sm:$0xff]   ;;  %v1856_v44 = vld [vmem:[%s2873_s3 + $0x8] sm:$0xff]   ;;  %v1861_v47 = vld [vmem:[%s2873_s3 + $0xd0] sm:$0xff]  }
  0x1d   : > { %475 = vmatprep.subr.bf16.mxu0 %v1827_v17  ;;  %588 = vmatprep.subr.bf16.mxu1 %v1829_v18  ;;  %v1854_v39 = vld [vmem:[%s2873_s3 + $0x80] sm:$0xff]   ;;  %v1858_v45 = vld [vmem:[%s2873_s3 + $0x88] sm:$0xff]   ;;  %v1860_v49 = vld [vmem:[%s2873_s3 + $0x10] sm:$0xff]  }
  0x1e   : > { %v1862_v50 = vld [vmem:[%s2873_s3 + $0x90] sm:$0xff]   ;;  %v1863_v51 = vld [vmem:[%s2873_s3 + $0x58] sm:$0xff]   ;;  %v233_v52 = vld [vmem:[%s2164_s30 + $0x20] sm:$0xff] }
  0x1f   : > { %v1865_v53 = vld [vmem:[%s2873_s3 + $0xd8] sm:$0xff]   ;;  %v234_v54 = vld [vmem:[%s2164_s30 + $0x28] sm:$0xff]  ;;  %v1867_v57 = vld [vmem:[%s2873_s3 + $0x60] sm:$0xff]  }
  0x20   : > { %476 = vmatpush1.bf16.msra.mxu0 %v1831_v19  ;;  %589 = vmatpush1.bf16.msra.mxu1 %v1832_v20  ;;  %v1864_v55 = vld [vmem:[%s2873_s3 + $0x18] sm:$0xff]   ;;  %v1869_v58 = vld [vmem:[%s2873_s3 + $0xe0] sm:$0xff]   ;;  %v247_v59 = vpack.c.bf16 %v234_v54, %v233_v52  ;;  %v235_v62 = vld [vmem:[%s2164_s30 + $0x30] sm:$0xff] }
  0x21   : > { %477 = vmatprep.subr.bf16.mxu0 %v1833_v21  ;;  %590 = vmatprep.subr.bf16.mxu1 %v1835_v22  ;;  %v1866_v56 = vld [vmem:[%s2873_s3 + $0x98] sm:$0xff]   ;;  %v1868_v60 = vld [vmem:[%s2873_s3 + $0x20] sm:$0xff]   ;;  %v238_v3 = vld [vmem:[%s2164_s30 + $0x48] sm:$0xff] }
  0x22   : > { %v1870_v61 = vld [vmem:[%s2873_s3 + $0xa0] sm:$0xff]   ;;  %v236_v63 = vld [vmem:[%s2164_s30 + $0x38] sm:$0xff]  ;;  %v239_v5 = vld [vmem:[%s2164_s30 + $0x50] sm:$0xff] }
  0x23   : > { %v248_v0 = vpack.c.bf16 %v236_v63, %v235_v62  ;;  %v237_v1 = vld [vmem:[%s2164_s30 + $0x40] sm:$0xff]  ;;  %v240_v6 = vld [vmem:[%s2164_s30 + $0x58] sm:$0xff]  ;;  %v242_v9 = vld [vmem:[%s2164_s30 + $0x68] sm:$0xff] }
  0x24   : > { %478 = vmatpush1.bf16.msra.mxu0 %v1837_v23  ;;  %591 = vmatpush1.bf16.msra.mxu1 %v1838_v24  ;;  %v249_v4 = vpack.c.bf16 %v238_v3, %v237_v1  ;;  %v250_v7 = vpack.c.bf16 %v240_v6, %v239_v5  ;;  %v241_v8 = vld [vmem:[%s2164_s30 + $0x60] sm:$0xff]  ;;  %v243_v11 = vld [vmem:[%s2164_s30 + $0x70] sm:$0xff]  ;;  %v244_v12 = vld [vmem:[%s2164_s30 + $0x78] sm:$0xff] }
  0x25   : > { %479 = vmatprep.subr.bf16.mxu0 %v1839_v25  ;;  %592 = vmatprep.subr.bf16.mxu1 %v1841_v26  ;;  %v251_v10 = vpack.c.bf16 %v242_v9, %v241_v8  ;;  %v252_v13 = vpack.c.bf16 %v244_v12, %v243_v11  ;;  %v1871_v14 = vld [vmem:[%s2873_s3 + $0x68] sm:$0xff]   ;;  %v1875_v17 = vld [vmem:[%s2873_s3 + $0x70] sm:$0xff]   ;;  %v1879_v21 = vld [vmem:[%s2873_s3 + $0x78] sm:$0xff]   ;;  %v287_v25 = vlaneseq }
  0x26   : > { %v1872_v15 = vld [vmem:[%s2873_s3 + $0x28] sm:$0xff]   ;;  %v1876_v18 = vld [vmem:[%s2873_s3 + $0x30] sm:$0xff]   ;;  %v1880_v22 = vld [vmem:[%s2873_s3 + $0x38] sm:$0xff]  }
  0x27   : > { %v1873_v16 = vld [vmem:[%s2873_s3 + $0xe8] sm:$0xff]   ;;  %v1877_v19 = vld [vmem:[%s2873_s3 + $0xf0] sm:$0xff]   ;;  %v1881_v23 = vld [vmem:[%s2873_s3 + $0xf8] sm:$0xff]   ;;  %v288_v26 = vshrl.u32 %v287_v25, 7 }
  0x28   : > { %480 = vmatpush1.bf16.msra.mxu0 %v1843_v27  ;;  %593 = vmatpush1.bf16.msra.mxu1 %v1844_v28  ;;  %v1878_v20 = vld [vmem:[%s2873_s3 + $0xb0] sm:$0xff]   ;;  %v1882_v24 = vld [vmem:[%s2873_s3 + $0xb8] sm:$0xff]  }
  0x29   : > { %481 = vmatprep.subr.bf16.mxu0 %v1845_v29  ;;  %594 = vmatprep.subr.bf16.mxu1 %v1847_v30  ;;  %v289_v27 = vsub.s32 0, %v288_v26  ;;  %v297_v28 = vsub.s32 2, %v288_v26  ;;  %v285_v29 = vld [vmem:[%s2872_s2] sm:$0xf]  ;;  %v293_v30 = vsub.s32 1, %v288_v26 }
  0x2b   : > { %v2315_v33 = vrot.slane %v285_v29, %v297_v28  ;;  %v2317_v34 = vrot.slane %v285_v29, %v293_v30 }
  0x2c   : > { %482 = vmatpush1.bf16.msra.mxu0 %v1849_v31  ;;  %595 = vmatpush1.bf16.msra.mxu1 %v1850_v32  ;;  %v301_v31 = vsub.s32 3, %v288_v26  ;;  %v2313_v32 = vrot.slane %v285_v29, %v289_v27 }
  0x2d   : > { %1666 = vmatprep.subr.bf16.mxu0 %v1851_v35  ;;  %1730 = vmatprep.subr.bf16.mxu1 %v1853_v36 }
  0x2e   : > { %v2319_v35 = vrot.slane %v285_v29, %v301_v31 }
  0x2f   : > { %500 = vmatmul.mubr.bf16.vlgmr.msra.gmra.mrb[0].mxu0 %v245_v37  ;;  %613 = vmatmul.mubr.bf16.vlgmr.msra.gmra.mrb[0].mxu1 %v245_v37 }
  0x30   : > { %509 = vmatprep.mubr.bf16.mxu0 %v2035_v2  ;;  %622 = vmatprep.mubr.bf16.mxu1 %v2035_v2 }
  0x31   : > { %1667 = vmatpush3.bf16.msra.mxu0 %v1852_v38  ;;  %1731 = vmatpush3.bf16.msra.mxu1 %v1854_v39 }
  0x32   : > { %1668 = vmatprep.subr.bf16.mxu0 %v1855_v40  ;;  %1732 = vmatprep.subr.bf16.mxu1 %v1857_v43 }
  0x35   : > { %1669 = vmatpush3.bf16.msra.mxu0 %v1856_v44  ;;  %1733 = vmatpush3.bf16.msra.mxu1 %v1858_v45 }
  0x36   : > { %1670 = vmatprep.subr.bf16.mxu0 %v1859_v46  ;;  %1734 = vmatprep.subr.bf16.mxu1 %v1861_v47 }
  0x37   : > { %510 = vmatmul.mubr.bf16.gmra.mrb[4].mxu0 %v246_v48  ;;  %623 = vmatmul.mubr.bf16.gmra.mrb[4].mxu1 %v246_v48 }
  0x38   : > { %519 = vmatprep.mubr.bf16.mxu0 %v2035_v2  ;;  %632 = vmatprep.mubr.bf16.mxu1 %v2035_v2 }
  0x39   : > { %1671 = vmatpush3.bf16.msra.mxu0 %v1860_v49  ;;  %1735 = vmatpush3.bf16.msra.mxu1 %v1862_v50 }
  0x3a   : > { %1672 = vmatprep.subr.bf16.mxu0 %v1863_v51  ;;  %1736 = vmatprep.subr.bf16.mxu1 %v1865_v53 }
  0x3d   : > { %1673 = vmatpush3.bf16.msra.mxu0 %v1864_v55  ;;  %1737 = vmatpush3.bf16.msra.mxu1 %v1866_v56 }
  0x3e   : > { %1674 = vmatprep.subr.bf16.mxu0 %v1867_v57  ;;  %1738 = vmatprep.subr.bf16.mxu1 %v1869_v58 }
  0x3f   : > { %520 = vmatmul.mubr.bf16.gmra.mrb[8].mxu0 %v247_v59  ;;  %633 = vmatmul.mubr.bf16.gmra.mrb[8].mxu1 %v247_v59 }
  0x40   : > { %529 = vmatprep.mubr.bf16.mxu0 %v2035_v2  ;;  %642 = vmatprep.mubr.bf16.mxu1 %v2035_v2 }
  0x41   : > { %1675 = vmatpush3.bf16.msra.mxu0 %v1868_v60  ;;  %1739 = vmatpush3.bf16.msra.mxu1 %v1870_v61 }
  0x42   : > { %1676 = vmatprep.subr.bf16.mxu0 %v1871_v14  ;;  %1740 = vmatprep.subr.bf16.mxu1 %v1873_v16 }
  0x45   : > { %1677 = vmatpush3.bf16.msra.mxu0 %v1872_v15 }
  0x46   : > { %1678 = vmatprep.subr.bf16.mxu0 %v1875_v17 }
  0x47   : > { %530 = vmatmul.mubr.bf16.gmra.mrb[12].mxu0 %v248_v0  ;;  %643 = vmatmul.mubr.bf16.gmra.mrb[12].mxu1 %v248_v0 }
  0x48   : > { %539 = vmatprep.mubr.bf16.mxu0 %v2035_v2  ;;  %652 = vmatprep.mubr.bf16.mxu1 %v2035_v2 }
  0x49   : > { %1679 = vmatpush3.bf16.msra.mxu0 %v1876_v18 }
  0x4a   : > { %1680 = vmatprep.subr.bf16.mxu0 %v1879_v21 }
  0x4d   : > { %1681 = vmatpush3.bf16.msra.mxu0 %v1880_v22 }
  0x4f   : > { %540 = vmatmul.mubr.bf16.gmra.mrb[16].mxu0 %v249_v4  ;;  %653 = vmatmul.mubr.bf16.gmra.mrb[16].mxu1 %v249_v4 }
  0x50   : > { %549 = vmatprep.mubr.bf16.mxu0 %v2035_v2  ;;  %662 = vmatprep.mubr.bf16.mxu1 %v2035_v2 }
  0x57   : > { %550 = vmatmul.mubr.bf16.gmra.mrb[20].mxu0 %v250_v7  ;;  %663 = vmatmul.mubr.bf16.gmra.mrb[20].mxu1 %v250_v7 }
  0x58   : > { %559 = vmatprep.mubr.bf16.mxu0 %v2035_v2  ;;  %672 = vmatprep.mubr.bf16.mxu1 %v2035_v2 }
  0x5f   : > { %560 = vmatmul.mubr.bf16.gmra.mrb[24].mxu0 %v251_v10  ;;  %673 = vmatmul.mubr.bf16.gmra.mrb[24].mxu1 %v251_v10 }
  0x60   : > { %569 = vmatprep.mubr.bf16.mxu0 %v2035_v2  ;;  %682 = vmatprep.mubr.bf16.mxu1 %v2035_v2  ;;  %v1874_v2 = vld [vmem:[%s2873_s3 + $0xa8] sm:$0xff]  }
  0x61   : > { %1741 = vmatpush3.bf16.msra.mxu1 %v1874_v2 }
  0x62   : > { %1742 = vmatprep.subr.bf16.mxu1 %v1877_v19 }
  0x65   : > { %1743 = vmatpush3.bf16.msra.mxu1 %v1878_v20 }
  0x66   : > { %1744 = vmatprep.subr.bf16.mxu1 %v1881_v23 }
  0x67   : > { %570 = vmatmul.mubr.bf16.gmra.mrb[28].mxu0 %v252_v13  ;;  %683 = vmatmul.mubr.bf16.gmra.mrb[28].mxu1 %v252_v13 }
  0x69   : > { %1745 = vmatpush3.bf16.msra.mxu1 %v1882_v24 }
 0x102   : > { %v501_v36 = vpop.f32.mrb[0].mxu0  ;;  %v614_v37 = vpop.f32.mrb[0].mxu1 }
 0x103   : > { %v502_v38 = vadd.f32 %v501_v36, %v2313_v32  ;;  %v615_v39 = vadd.f32 %v614_v37, %v2315_v33  ;;  %v503_v40 = vpop.f32.mrb[1].mxu0  ;;  %v616_v41 = vpop.f32.mrb[1].mxu1 }
 0x104   : > { %v504_v42 = vadd.f32 %v503_v40, %v2317_v34  ;;  %v617_v43 = vadd.f32 %v616_v41, %v2319_v35  ;;  %v505_v44 = vpop.f32.mrb[2].mxu0  ;;  %v618_v45 = vpop.f32.mrb[2].mxu1 }
 0x105   : > { %v757_v46 = vmul.f32 0.70710677, %v502_v38  ;;  %v759_v47 = vmul.f32 0.70710677, %v615_v39  ;;  %v506_v50 = vadd.f32 %v505_v44, %v2313_v32  ;;  %v619_v51 = vadd.f32 %v618_v45, %v2315_v33  ;;  %v507_v52 = vpop.f32.mrb[3].mxu0  ;;  %v620_v53 = vpop.f32.mrb[3].mxu1 }
 0x106   : > { %v758_v48 = vmul.f32 0.70710677, %v504_v42  ;;  %v760_v49 = vmul.f32 0.70710677, %v617_v43  ;;  %v508_v54 = vadd.f32 %v507_v52, %v2317_v34  ;;  %v621_v55 = vadd.f32 %v620_v53, %v2319_v35 }
 0x107   : > { %1883 = verf.f32 %v757_v46  ;;  %v761_v56 = vmul.f32 0.70710677, %v506_v50  ;;  %v763_v57 = vmul.f32 0.70710677, %v619_v51  ;;  %v693_v11 = vmul.f32 0.5, %v502_v38 }
 0x108   : > { %1885 = verf.f32 %v759_v47  ;;  %v762_v58 = vmul.f32 0.70710677, %v508_v54  ;;  %v764_v60 = vmul.f32 0.70710677, %v621_v55  ;;  %v695_v17 = vmul.f32 0.5, %v615_v39 }
 0x109   : > { %1887 = verf.f32 %v758_v48  ;;  %v694_v18 = vmul.f32 0.5, %v504_v42  ;;  %v2336_v19 = vmul.f32 0.5, %v617_v43  ;;  %v697_v20 = vmul.f32 0.5, %v506_v50 }
 0x10a   : > { %1889 = verf.f32 %v760_v49  ;;  %v511_v59 = vpop.f32.mrb[4].mxu0  ;;  %v624_v62 = vpop.f32.mrb[4].mxu1  ;;  %v699_v23 = vmul.f32 0.5, %v619_v51  ;;  %v2338_v28 = vmul.f32 0.5, %v508_v54  ;;  %v2340_v29 = vmul.f32 0.5, %v621_v55 }
 0x10b   : > { %1891 = verf.f32 %v761_v56  ;;  %v512_v61 = vadd.f32 %v511_v59, %v2313_v32  ;;  %v513_v63 = vpop.f32.mrb[5].mxu0  ;;  %v625_v0 = vadd.f32 %v624_v62, %v2315_v33  ;;  %v626_v3 = vpop.f32.mrb[5].mxu1 }
 0x10c   : > { %1893 = verf.f32 %v763_v57  ;;  %v514_v1 = vadd.f32 %v513_v63, %v2317_v34  ;;  %v515_v4 = vpop.f32.mrb[6].mxu0  ;;  %v627_v6 = vadd.f32 %v626_v3, %v2319_v35  ;;  %v628_v7 = vpop.f32.mrb[6].mxu1 }
 0x10d   : > { %1895 = verf.f32 %v762_v58  ;;  %v765_v5 = vmul.f32 0.70710677, %v512_v61  ;;  %v517_v8 = vpop.f32.mrb[7].mxu0  ;;  %v767_v9 = vmul.f32 0.70710677, %v625_v0  ;;  %v630_v10 = vpop.f32.mrb[7].mxu1  ;;  %v516_v14 = vadd.f32 %v515_v4, %v2313_v32 }
 0x10e   : > { %1897 = verf.f32 %v764_v60  ;;  %v766_v12 = vmul.f32 0.70710677, %v514_v1  ;;  %v768_v13 = vmul.f32 0.70710677, %v627_v6  ;;  %v629_v15 = vadd.f32 %v628_v7, %v2315_v33 }
 0x10f   : > { %1899 = verf.f32 %v765_v5  ;;  %v518_v16 = vadd.f32 %v517_v8, %v2317_v34  ;;  %v769_v24 = vmul.f32 0.70710677, %v516_v14  ;;  %v631_v31 = vadd.f32 %v630_v10, %v2319_v35 }
 0x110   : > { %1901 = verf.f32 %v767_v9  ;;  %v771_v30 = vmul.f32 0.70710677, %v629_v15  ;;  %v2343_v39 = vmul.f32 0.5, %v512_v61  ;;  %v2345_v44 = vmul.f32 0.5, %v625_v0 }
 0x111   : > { %v1884_v2 = vpop.eup %1883  ;;  %1903 = verf.f32 %v766_v12  ;;  %v770_v40 = vmul.f32 0.70710677, %v518_v16  ;;  %v2347_v45 = vmul.f32 0.5, %v514_v1  ;;  %v2349_v46 = vmul.f32 0.5, %v627_v6 }
 0x112   : > { %v1886_v21 = vpop.eup %1885  ;;  %v885_v22 = vadd.f32 1.0, %v1884_v2  ;;  %v521_v25 = vpop.f32.mrb[8].mxu0  ;;  %1905 = verf.f32 %v768_v13  ;;  %v2355_v53 = vmul.f32 0.5, %v516_v14  ;;  %v772_v57 = vmul.f32 0.70710677, %v631_v31 }
 0x113   : > { %v634_v26 = vpop.f32.mrb[8].mxu1  ;;  %v1888_v27 = vpop.eup %1887  ;;  %v887_v38 = vadd.f32 1.0, %v1886_v21  ;;  %1907 = verf.f32 %v769_v24  ;;  %v522_v58 = vadd.f32 %v521_v25, %v2313_v32  ;;  %v2370_v7 = vmul.f32 0.5, %v629_v15 }
 0x114   : > { %v523_v36 = vpop.f32.mrb[9].mxu0  ;;  %v1890_v37 = vpop.eup %1889  ;;  %v2353_v50 = vmul.f32 %v885_v22, %v693_v11  ;;  %v886_v51 = vadd.f32 1.0, %v1888_v27  ;;  %1909 = verf.f32 %v771_v30  ;;  %v635_v62 = vadd.f32 %v634_v26, %v2315_v33 }
 0x115   : > { %v636_v41 = vpop.f32.mrb[9].mxu1  ;;  %v525_v42 = vpop.f32.mrb[10].mxu0  ;;  %v2360_v60 = vmul.f32 %v887_v38, %v695_v17  ;;  %1911 = verf.f32 %v770_v40  ;;  %v888_v0 = vadd.f32 1.0, %v1890_v37  ;;  %v773_v3 = vmul.f32 0.70710677, %v522_v58 }
 0x116   : > { %v1892_v43 = vpop.eup %1891  ;;  %v638_v47 = vpop.f32.mrb[10].mxu1  ;;  %v524_v4 = vadd.f32 %v523_v36, %v2317_v34  ;;  %v2372_v8 = vmul.f32 0.5, %v518_v16  ;;  %v2374_v9 = vmul.f32 0.5, %v631_v31  ;;  %v2378_v12 = vmul.f32 %v886_v51, %v694_v18 }
 0x117   : > { %v2351_v48 = vpop.f32.mrb[11].mxu0  ;;  %v1894_v49 = vpop.eup %1893  ;;  %v889_v52 = vadd.f32 1.0, %v1892_v43  ;;  %1913 = verf.f32 %v772_v57  ;;  %v775_v21 = vmul.f32 0.70710677, %v635_v62  ;;  %v2391_v18 = vmul.f32 %v888_v0, %v2336_v19 }
 0x118   : > { %v2357_v54 = vpop.f32.mrb[11].mxu1  ;;  %v1896_v55 = vpop.eup %1895  ;;  %v891_v56 = vadd.f32 1.0, %v1894_v49  ;;  %1915 = verf.f32 %v773_v3  ;;  %v774_v25 = vmul.f32 0.70710677, %v524_v4  ;;  %v637_v26 = vadd.f32 %v636_v41, %v2319_v35 }
 0x119   : > { %v1898_v59 = vpop.eup %1897  ;;  %v2362_v61 = vmul.f32 %v889_v52, %v697_v20  ;;  %v890_v14 = vadd.f32 1.0, %v1896_v55  ;;  %v2398_v36 = vmul.f32 0.5, %v522_v58  ;;  %1917 = verf.f32 %v775_v21 }
 0x11a   : > { %v1900_v63 = vpop.eup %1899  ;;  %v2365_v1 = vmul.f32 %v891_v56, %v699_v23  ;;  %v531_v10 = vpop.f32.mrb[12].mxu0  ;;  %v892_v20 = vadd.f32 1.0, %v1898_v59  ;;  %v526_v37 = vadd.f32 %v525_v42, %v2313_v32  ;;  %v639_v38 = vadd.f32 %v638_v47, %v2315_v33 }
 0x11b   : > { %v1902_v5 = vpop.eup %1901  ;;  %v1013_v6 = vpack.c.bf16 %v2362_v61, %v2353_v50  ;;  %v2376_v11 = vpop.f32.mrb[12].mxu1  ;;  %v893_v16 = vadd.f32 1.0, %v1900_v63  ;;  %v954_v19 = vmul.f32 %v890_v14, %v2338_v28  ;;  %v2403_v49 = vmul.f32 0.5, %v635_v62 }
 0x11c   : > { %v1015_v13 = vpack.c.bf16 %v2365_v1, %v2360_v60  ;;  %v2382_v2 = vpop.f32.mrb[13].mxu0  ;;  %v2384_v17 = vpop.f32.mrb[13].mxu1  ;;  %v895_v24 = vadd.f32 1.0, %v1902_v5  ;;  %1919 = verf.f32 %v774_v25  ;;  %v956_v41 = vmul.f32 %v892_v20, %v2340_v29 }
 0x11d   : > { %v1904_v15 = vpop.eup %1903  ;;  %v2386_v22 = vpop.f32.mrb[14].mxu0  ;;  %v2407_v51 = vmul.f32 %v893_v16, %v2343_v39  ;;  %v776_v52 = vmul.f32 0.70710677, %v637_v26  ;;  %v777_v55 = vmul.f32 0.70710677, %v526_v37  ;;  %v2412_v47 = vmul.f32 0.5, %v524_v4 }
 0x11e   : > { %v2388_v23 = vpop.f32.mrb[14].mxu1  ;;  %v2394_v27 = vpop.f32.mrb[15].mxu0  ;;  %v894_v43 = vadd.f32 1.0, %v1904_v15  ;;  %v2410_v57 = vmul.f32 %v895_v24, %v2345_v44  ;;  %v779_v58 = vmul.f32 0.70710677, %v639_v38  ;;  %v528_v62 = vadd.f32 %v2351_v48, %v2317_v34 }
 0x11f   : > { %v2396_v30 = vpop.f32.mrb[15].mxu1  ;;  %v1906_v31 = vpop.eup %1905  ;;  %1921 = verf.f32 %v776_v52  ;;  %v641_v29 = vadd.f32 %v2357_v54, %v2319_v35  ;;  %v2425_v0 = vmul.f32 0.5, %v637_v26  ;;  %v532_v3 = vadd.f32 %v531_v10, %v2313_v32 }
 0x120   : > { %v1908_v40 = vpop.eup %1907  ;;  %v896_v42 = vadd.f32 1.0, %v1906_v31  ;;  %v2423_v44 = vmul.f32 %v894_v43, %v2347_v45  ;;  %1923 = verf.f32 %v777_v55  ;;  %v2432_v14 = vmul.f32 0.5, %v526_v37 }
 0x121   : > { %v1910_v56 = vpop.eup %1909  ;;  %v897_v59 = vadd.f32 1.0, %v1908_v40  ;;  %1925 = verf.f32 %v779_v58  ;;  %v778_v54 = vmul.f32 0.70710677, %v528_v62  ;;  %v780_v24 = vmul.f32 0.70710677, %v641_v29 }
 0x122   : > { %v1912_v28 = vpop.eup %1911  ;;  %v2418_v39 = vpop.f32.mrb[16].mxu0  ;;  %v899_v48 = vadd.f32 1.0, %v1910_v56  ;;  %v2439_v16 = vmul.f32 %v896_v42, %v2349_v46  ;;  %v781_v10 = vmul.f32 0.70710677, %v532_v3  ;;  %v645_v37 = vadd.f32 %v2376_v11, %v2315_v33 }
 0x123   : > { %v2420_v63 = vpop.f32.mrb[16].mxu1  ;;  %v2428_v4 = vpop.f32.mrb[17].mxu0  ;;  %v898_v21 = vadd.f32 1.0, %v1912_v28  ;;  %v2444_v31 = vmul.f32 %v897_v59, %v2355_v53  ;;  %1927 = verf.f32 %v778_v54  ;;  %v534_v40 = vadd.f32 %v2382_v2, %v2317_v34 }
 0x124   : > { %v2430_v5 = vpop.f32.mrb[17].mxu1  ;;  %v2434_v15 = vpop.f32.mrb[18].mxu0  ;;  %1929 = verf.f32 %v780_v24  ;;  %v647_v46 = vadd.f32 %v2384_v17, %v2319_v35  ;;  %v1014_v52 = vpack.c.bf16 %v954_v19, %v2378_v12  ;;  %v1016_v55 = vpack.c.bf16 %v956_v41, %v2391_v18 }
 0x125   : > { %v2436_v20 = vpop.f32.mrb[18].mxu1  ;;  %v1914_v45 = vpop.eup %1913  ;;  %v2457_v53 = vmul.f32 %v899_v48, %v2370_v7  ;;  %v2459_v58 = vmul.f32 0.5, %v639_v38  ;;  %v783_v11 = vmul.f32 0.70710677, %v645_v37  ;;  %v2462_v2 = vmul.f32 %v898_v21, %v2372_v8 }
 0x126   : > { %v2441_v25 = vpop.f32.mrb[19].mxu0  ;;  %v1916_v26 = vpop.eup %1915  ;;  %v900_v42 = vadd.f32 1.0, %v1914_v45  ;;  %1931 = verf.f32 %v781_v10  ;;  %v782_v54 = vmul.f32 0.70710677, %v534_v40  ;;  %1340 = vmatprep.mubr.bf16.mxu0 %v1014_v52  ;;  %1437 = vmatprep.mubr.bf16.mxu1 %v1016_v55  ;;  %v2464_v12 = vmul.f32 0.5, %v528_v62 }
 0x127   : > { %v2450_v43 = vpop.f32.mrb[19].mxu1  ;;  %v1918_v56 = vpop.eup %1917  ;;  %v901_v59 = vadd.f32 1.0, %v1916_v26  ;;  %v2466_v17 = vmul.f32 0.5, %v641_v29  ;;  %v784_v18 = vmul.f32 0.70710677, %v647_v46  ;;  %v536_v7 = vadd.f32 %v2386_v22, %v2313_v32  ;;  %1341 = vmatmul.mubr.bf16.vlgmr.msra.gmra.mrb[32].mxu0 %v1013_v6  ;;  %1438 = vmatmul.mubr.bf16.vlgmr.msra.gmra.mrb[32].mxu1 %v1015_v13 }
 0x128   : > { %v1920_v28 = vpop.eup %1919  ;;  %v903_v19 = vadd.f32 1.0, %v1918_v56  ;;  %1933 = verf.f32 %v783_v11  ;;  %v649_v41 = vadd.f32 %v2388_v23, %v2315_v33  ;;  %v538_v22 = vadd.f32 %v2394_v27, %v2317_v34 }
 0x129   : > { %v1922_v61 = vpop.eup %1921  ;;  %v2489_v60 = vmul.f32 %v900_v42, %v2374_v9  ;;  %v902_v1 = vadd.f32 1.0, %v1920_v28  ;;  %1935 = verf.f32 %v782_v54  ;;  %v785_v6 = vmul.f32 0.70710677, %v536_v7 }
 0x12a   : > { %v2476_v8 = vpop.f32.mrb[20].mxu0  ;;  %v2478_v38 = vpop.f32.mrb[20].mxu1  ;;  %v2496_v23 = vmul.f32 %v901_v59, %v2398_v36  ;;  %v2498_v27 = vmul.f32 0.5, %v532_v3  ;;  %1937 = verf.f32 %v784_v18  ;;  %v787_v45 = vmul.f32 0.70710677, %v649_v41 }
 0x12b   : > { %v2484_v62 = vpop.f32.mrb[21].mxu0  ;;  %v2486_v50 = vpop.f32.mrb[21].mxu1  ;;  %v2502_v9 = vmul.f32 0.5, %v645_v37  ;;  %v2504_v10 = vmul.f32 0.5, %v534_v40  ;;  %v786_v26 = vmul.f32 0.70710677, %v538_v22  ;;  %v651_v52 = vadd.f32 %v2396_v30, %v2319_v35 }
 0x12c   : > { %v2491_v13 = vpop.f32.mrb[22].mxu0  ;;  %v2493_v29 = vpop.f32.mrb[22].mxu1  ;;  %v2511_v36 = vmul.f32 %v903_v19, %v2403_v49  ;;  %v2513_v3 = vmul.f32 0.5, %v647_v46  ;;  %1939 = verf.f32 %v785_v6  ;;  %v542_v56 = vadd.f32 %v2418_v39, %v2313_v32 }
 0x12d   : > { %v1924_v48 = vpop.eup %1923  ;;  %v2500_v21 = vpop.f32.mrb[23].mxu0  ;;  %v2518_v37 = vmul.f32 %v902_v1, %v2412_v47  ;;  %v904_v40 = vadd.f32 1.0, %v1922_v61  ;;  %1941 = verf.f32 %v787_v45  ;;  %v788_v11 = vmul.f32 0.70710677, %v651_v52 }
 0x12e   : > { %v1926_v24 = vpop.eup %1925  ;;  %v2508_v55 = vpop.f32.mrb[23].mxu1  ;;  %v905_v30 = vadd.f32 1.0, %v1924_v48  ;;  %1943 = verf.f32 %v786_v26  ;;  %v789_v54 = vmul.f32 0.70710677, %v542_v56  ;;  %v655_v46 = vadd.f32 %v2420_v63, %v2315_v33 }
 0x12f   : > { %v1928_v42 = vpop.eup %1927  ;;  %v907_v59 = vadd.f32 1.0, %v1926_v24  ;;  %1945 = verf.f32 %v788_v11  ;;  %v544_v39 = vadd.f32 %v2428_v4, %v2317_v34  ;;  %v2528_v1 = vmul.f32 0.5, %v536_v7 }
 0x130   : > { %v1930_v28 = vpop.eup %1929  ;;  %v906_v49 = vadd.f32 1.0, %v1928_v42  ;;  %1947 = verf.f32 %v789_v54  ;;  %v657_v6 = vadd.f32 %v2430_v5, %v2319_v35  ;;  %v2537_v63 = vmul.f32 %v904_v40, %v2425_v0 }
 0x131   : > { %v1932_v19 = vpop.eup %1931  ;;  %v908_v61 = vadd.f32 1.0, %v1930_v28  ;;  %v2539_v4 = vmul.f32 0.5, %v649_v41  ;;  %v2541_v24 = vmul.f32 0.5, %v538_v22  ;;  %v791_v26 = vmul.f32 0.70710677, %v655_v46 }
 0x132   : > { %v2524_v18 = vpop.f32.mrb[24].mxu0  ;;  %v2526_v47 = vpop.f32.mrb[24].mxu1  ;;  %v2548_v28 = vmul.f32 %v905_v30, %v2432_v14  ;;  %v2551_v5 = vmul.f32 %v907_v59, %v2459_v58  ;;  %v2553_v54 = vmul.f32 0.5, %v651_v52  ;;  %v2555_v0 = vmul.f32 0.5, %v542_v56 }
 0x133   : > { %v2532_v48 = vpop.f32.mrb[25].mxu0  ;;  %v2534_v45 = vpop.f32.mrb[25].mxu1  ;;  %v1018_v14 = vpack.c.bf16 %v2462_v2, %v2423_v44  ;;  %v2567_v58 = vmul.f32 %v908_v61, %v2466_v17  ;;  %1949 = verf.f32 %v791_v26  ;;  %v792_v52 = vmul.f32 0.70710677, %v657_v6 }
 0x134   : > { %2876 = vst [vmem:[#allocation2_spill] sm:$0xff] %v2534_v45  ;;  %v2543_v42 = vpop.f32.mrb[26].mxu0  ;;  %v2545_v7 = vpop.f32.mrb[26].mxu1  ;;  %v790_v45 = vmul.f32 0.70710677, %v544_v39  ;;  %v1020_v56 = vpack.c.bf16 %v2489_v60, %v2439_v16  ;;  %v1017_v17 = vpack.c.bf16 %v2444_v31, %v2407_v51  ;;  %v1019_v16 = vpack.c.bf16 %v2457_v53, %v2410_v57 }
 0x135   : > { %2877 = vst [vmem:[#allocation3_spill] sm:$0xff] %v2543_v42  ;;  %2878 = vst [vmem:[#allocation4_spill] sm:$0xff] %v2545_v7  ;;  %v1934_v11 = vpop.eup %1933  ;;  %v2557_v41 = vpop.f32.mrb[27].mxu0  ;;  %v2562_v42 = vmul.f32 %v906_v49, %v2464_v12  ;;  %v909_v7 = vadd.f32 1.0, %v1932_v19  ;;  %1348 = vmatprep.mubr.bf16.mxu0 %v1018_v14  ;;  %v546_v12 = vadd.f32 %v2434_v15, %v2313_v32  ;;  %v2577_v19 = vmul.f32 0.5, %v544_v39 }
 0x136   : > { %v2559_v22 = vpop.f32.mrb[27].mxu1  ;;  %v1936_v40 = vpop.eup %1935  ;;  %v911_v59 = vadd.f32 1.0, %v1934_v11  ;;  %v659_v49 = vadd.f32 %v2436_v20, %v2315_v33  ;;  %1445 = vmatprep.mubr.bf16.mxu1 %v1020_v56  ;;  %1951 = verf.f32 %v790_v45  ;;  %v2588_v11 = vmul.f32 0.5, %v657_v6  ;;  %1349 = vmatmul.mubr.bf16.gmra.mrb[36].mxu0 %v1017_v17 }
 0x137   : > { %2879 = vst [vmem:[#allocation5_spill] sm:$0xff] %v2559_v22  ;;  %v1938_v30 = vpop.eup %1937  ;;  %v2571_v22 = vmul.f32 0.5, %v655_v46  ;;  %v910_v2 = vadd.f32 1.0, %v1936_v40  ;;  %v2584_v46 = vmul.f32 %v909_v7, %v2498_v27  ;;  %v793_v15 = vmul.f32 0.70710677, %v546_v12  ;;  %1446 = vmatmul.mubr.bf16.gmra.mrb[36].mxu1 %v1019_v16 }
 0x138   : > { %v1940_v44 = vpop.eup %1939  ;;  %v912_v61 = vadd.f32 1.0, %v1938_v30  ;;  %1953 = verf.f32 %v792_v52  ;;  %v795_v39 = vmul.f32 0.70710677, %v659_v49  ;;  %v548_v51 = vadd.f32 %v2441_v25, %v2317_v34 }
 0x139   : > { %v1942_v60 = vpop.eup %1941  ;;  %v2597_v27 = vmul.f32 %v911_v59, %v2502_v9  ;;  %1955 = verf.f32 %v793_v15  ;;  %v661_v6 = vadd.f32 %v2450_v43, %v2319_v35  ;;  %v552_v45 = vadd.f32 %v2476_v8, %v2313_v32 }
 0x13a   : > { %v2586_v26 = vpop.f32.mrb[28].mxu0  ;;  %v1944_v20 = vpop.eup %1943  ;;  %v2608_v14 = vmul.f32 %v910_v2, %v2504_v10  ;;  %v913_v30 = vadd.f32 1.0, %v1940_v44  ;;  %v915_v52 = vadd.f32 1.0, %v1942_v60  ;;  %1957 = verf.f32 %v795_v39 }
 0x13b   : > { %v2592_v57 = vpop.f32.mrb[28].mxu1  ;;  %v2594_v31 = vpop.f32.mrb[29].mxu0  ;;  %v2615_v43 = vmul.f32 %v912_v61, %v2513_v3  ;;  %v914_v59 = vadd.f32 1.0, %v1944_v20  ;;  %v794_v8 = vmul.f32 0.70710677, %v548_v51  ;;  %v665_v10 = vadd.f32 %v2478_v38, %v2315_v33 }
 0x13c   : > { %v1946_v53 = vpop.eup %1945  ;;  %v2603_v7 = vpop.f32.mrb[29].mxu1  ;;  %v796_v17 = vmul.f32 0.70710677, %v661_v6  ;;  %v797_v2 = vmul.f32 0.70710677, %v552_v45  ;;  %v554_v60 = vadd.f32 %v2484_v62, %v2317_v34  ;;  %v667_v3 = vadd.f32 %v2486_v50, %v2319_v35 }
 0x13d   : > { %v2605_v40 = vpop.f32.mrb[30].mxu0  ;;  %v1948_v25 = vpop.eup %1947  ;;  %v916_v16 = vadd.f32 1.0, %v1946_v53  ;;  %1959 = verf.f32 %v794_v8  ;;  %v2628_v20 = vmul.f32 %v913_v30, %v2528_v1  ;;  %v731_v39 = vmul.f32 0.5, %v659_v49 }
 0x13e   : > { %2880 = vst [vmem:[#allocation6_spill] sm:$0xff] %v2605_v40  ;;  %v2610_v9 = vpop.f32.mrb[30].mxu1  ;;  %v2612_v56 = vpop.f32.mrb[31].mxu0  ;;  %v917_v15 = vadd.f32 1.0, %v1948_v25  ;;  %v2617_v40 = vmul.f32 0.5, %v546_v12  ;;  %v2631_v12 = vmul.f32 %v915_v52, %v2539_v4  ;;  %v2634_v38 = vmul.f32 %v914_v59, %v2541_v24 }
 0x13f   : > { %v2621_v44 = vpop.f32.mrb[31].mxu1  ;;  %v1950_v61 = vpop.eup %1949  ;;  %v799_v53 = vmul.f32 0.70710677, %v665_v10  ;;  %v2636_v25 = vmul.f32 0.5, %v548_v51  ;;  %1961 = verf.f32 %v796_v17  ;;  %v798_v8 = vmul.f32 0.70710677, %v554_v60 }
 0x140   : > { %v2639_v62 = vmul.f32 %v916_v16, %v2553_v54  ;;  %v2642_v50 = vmul.f32 %v917_v15, %v2555_v0  ;;  %v2644_v1 = vmul.f32 0.5, %v661_v6  ;;  %v2646_v30 = vmul.f32 0.5, %v552_v45  ;;  %v1952_v4 = vpop.eup %1951 }
 0x141   : > { %v919_v49 = vadd.f32 1.0, %v1950_v61  ;;  %1963 = verf.f32 %v797_v2  ;;  %v800_v52 = vmul.f32 0.70710677, %v667_v3  ;;  %v1022_v24 = vpack.c.bf16 %v2562_v42, %v2518_v37 }
 0x142   : > { %v1954_v51 = vpop.eup %1953  ;;  %1965 = verf.f32 %v799_v53  ;;  %v1024_v54 = vpack.c.bf16 %v2567_v58, %v2537_v63  ;;  %v556_v0 = vadd.f32 %v2491_v13, %v2313_v32  ;;  %v669_v6 = vadd.f32 %v2493_v29, %v2315_v33 }
 0x143   : > { %v1956_v45 = vpop.eup %1955  ;;  %1967 = verf.f32 %v798_v8  ;;  %1356 = vmatprep.mubr.bf16.mxu0 %v1022_v24  ;;  %v1021_v59 = vpack.c.bf16 %v2548_v28, %v2496_v23  ;;  %v1023_v37 = vpack.c.bf16 %v2551_v5, %v2511_v36  ;;  %v558_v42 = vadd.f32 %v2500_v21, %v2317_v34 }
 0x144   : > { %v1958_v17 = vpop.eup %1957  ;;  %v918_v63 = vadd.f32 1.0, %v1952_v4  ;;  %v2662_v58 = vmul.f32 0.5, %v665_v10  ;;  %1969 = verf.f32 %v800_v52  ;;  %1453 = vmatprep.mubr.bf16.mxu1 %v1024_v54  ;;  %v801_v13 = vmul.f32 0.70710677, %v556_v0 }
 0x145   : > { %v920_v29 = vadd.f32 1.0, %v1954_v51  ;;  %v2664_v16 = vmul.f32 0.5, %v554_v60  ;;  %v803_v15 = vmul.f32 0.70710677, %v669_v6  ;;  %1357 = vmatmul.mubr.bf16.gmra.mrb[40].mxu0 %v1021_v59  ;;  %1454 = vmatmul.mubr.bf16.gmra.mrb[40].mxu1 %v1023_v37  ;;  %v802_v23 = vmul.f32 0.70710677, %v558_v42 }
 0x146   : > { %v2667_v28 = vmul.f32 %v919_v49, %v2571_v22  ;;  %1971 = verf.f32 %v801_v13  ;;  %v671_v21 = vadd.f32 %v2508_v55, %v2319_v35  ;;  %v562_v36 = vadd.f32 %v2524_v18, %v2313_v32 }
 0x147   : > { %v1960_v5 = vpop.eup %1959  ;;  %v921_v10 = vadd.f32 1.0, %v1956_v45  ;;  %v923_v2 = vadd.f32 1.0, %v1958_v17  ;;  %1973 = verf.f32 %v803_v15  ;;  %v675_v60 = vadd.f32 %v2526_v47, %v2315_v33  ;;  %v2881_v17 = vld [vmem:[#allocation2_spill] sm:$0xff]  ;;  %v2882_v15 = vld [vmem:[#allocation3_spill] sm:$0xff] }
 0x148   : > { %v2675_v61 = vmul.f32 0.5, %v667_v3  ;;  %1975 = verf.f32 %v802_v23  ;;  %v804_v53 = vmul.f32 0.70710677, %v671_v21  ;;  %v564_v22 = vadd.f32 %v2532_v48, %v2317_v34 }
 0x149   : > { %v1962_v8 = vpop.eup %1961  ;;  %v2680_v55 = vmul.f32 %v918_v63, %v2577_v19  ;;  %v2683_v18 = vmul.f32 %v920_v29, %v2588_v11  ;;  %v2685_v4 = vmul.f32 0.5, %v556_v0  ;;  %v805_v49 = vmul.f32 0.70710677, %v562_v36 }
 0x14a   : > { %v922_v52 = vadd.f32 1.0, %v1960_v5  ;;  %v2687_v24 = vmul.f32 0.5, %v669_v6  ;;  %1977 = verf.f32 %v804_v53  ;;  %v807_v47 = vmul.f32 0.70710677, %v675_v60  ;;  %v2883_v5 = vld [vmem:[#allocation4_spill] sm:$0xff] }
 0x14b   : > { %v1964_v3 = vpop.eup %1963  ;;  %v2690_v51 = vmul.f32 %v921_v10, %v2617_v40  ;;  %v2692_v48 = vmul.f32 %v923_v2, %v731_v39  ;;  %v2694_v54 = vmul.f32 0.5, %v558_v42  ;;  %1979 = verf.f32 %v805_v49 }
 0x14c   : > { %v1966_v19 = vpop.eup %1965  ;;  %v924_v11 = vadd.f32 1.0, %v1962_v8  ;;  %v2696_v45 = vmul.f32 0.5, %v671_v21  ;;  %v2698_v0 = vmul.f32 0.5, %v562_v36  ;;  %v806_v59 = vmul.f32 0.70710677, %v564_v22 }
 0x14d   : > { %v1968_v6 = vpop.eup %1967  ;;  %v2700_v37 = vmul.f32 0.5, %v675_v60  ;;  %v677_v63 = vadd.f32 %v2881_v17, %v2319_v35  ;;  %v1026_v40 = vpack.c.bf16 %v2634_v38, %v2608_v14  ;;  %v1028_v39 = vpack.c.bf16 %v2639_v62, %v2615_v43 }
 0x14e   : > { %v1970_v42 = vpop.eup %1969  ;;  %v2709_v13 = vmul.f32 %v922_v52, %v2636_v25  ;;  %v925_v29 = vadd.f32 1.0, %v1964_v3  ;;  %1981 = verf.f32 %v807_v47  ;;  %v566_v23 = vadd.f32 %v2882_v15, %v2313_v32 }
 0x14f   : > { %v927_v21 = vadd.f32 1.0, %v1966_v19  ;;  %v808_v36 = vmul.f32 0.70710677, %v677_v63  ;;  %1364 = vmatprep.mubr.bf16.mxu0 %v1026_v40  ;;  %1461 = vmatprep.mubr.bf16.mxu1 %v1028_v39  ;;  %v679_v10 = vadd.f32 %v2883_v5, %v2315_v33  ;;  %v1025_v14 = vpack.c.bf16 %v2628_v20, %v2584_v46  ;;  %v2884_v20 = vld [vmem:[#allocation5_spill] sm:$0xff] }
 0x150   : > { %v1972_v43 = vpop.eup %1971  ;;  %v926_v38 = vadd.f32 1.0, %v1968_v6  ;;  %1983 = verf.f32 %v806_v59  ;;  %v809_v25 = vmul.f32 0.70710677, %v566_v23  ;;  %v1027_v62 = vpack.c.bf16 %v2631_v12, %v2597_v27 }
 0x151   : > { %v1974_v2 = vpop.eup %1973  ;;  %v988_v60 = vmul.f32 %v924_v11, %v2644_v1  ;;  %v928_v53 = vadd.f32 1.0, %v1970_v42  ;;  %1985 = verf.f32 %v808_v36  ;;  %v811_v8 = vmul.f32 0.70710677, %v679_v10  ;;  %1365 = vmatmul.mubr.bf16.gmra.mrb[44].mxu0 %v1025_v14 }
 0x152   : > { %v1976_v49 = vpop.eup %1975  ;;  %v2720_v52 = vmul.f32 0.5, %v564_v22  ;;  %1987 = verf.f32 %v809_v25  ;;  %1462 = vmatmul.mubr.bf16.gmra.mrb[44].mxu1 %v1027_v62  ;;  %v568_v46 = vadd.f32 %v2557_v41, %v2317_v34  ;;  %v681_v47 = vadd.f32 %v2884_v20, %v2319_v35 }
 0x153   : > { %v2727_v27 = vmul.f32 %v925_v29, %v2646_v30  ;;  %v2730_v12 = vmul.f32 %v927_v21, %v2662_v58  ;;  %1989 = verf.f32 %v811_v8  ;;  %v2734_v1 = vadd.f32 %v2586_v26, %v2313_v32 }
 0x154   : > { %v1978_v22 = vpop.eup %1977  ;;  %v2737_v3 = vmul.f32 %v926_v38, %v2664_v16  ;;  %v929_v19 = vadd.f32 1.0, %v1972_v43  ;;  %v931_v41 = vadd.f32 1.0, %v1974_v2  ;;  %v810_v11 = vmul.f32 0.70710677, %v568_v46 }
 0x155   : > { %v1980_v59 = vpop.eup %1979  ;;  %v2740_v6 = vmul.f32 %v928_v53, %v2675_v61  ;;  %v930_v30 = vadd.f32 1.0, %v1976_v49  ;;  %v2742_v17 = vmul.f32 0.5, %v677_v63  ;;  %v812_v58 = vmul.f32 0.70710677, %v681_v47 }
 0x156   : > { %v932_v40 = vadd.f32 1.0, %v1978_v22  ;;  %v745_v39 = vmul.f32 0.5, %v566_v23  ;;  %1991 = verf.f32 %v810_v11  ;;  %v2746_v26 = vadd.f32 %v2592_v57, %v2315_v33 }
 0x157   : > { %v747_v16 = vmul.f32 0.5, %v679_v10  ;;  %1993 = verf.f32 %v812_v58  ;;  %v813_v42 = vmul.f32 0.70710677, %v2734_v1  ;;  %v2751_v29 = vadd.f32 %v2594_v31, %v2317_v34 }
 0x158   : > { %v1982_v61 = vpop.eup %1981  ;;  %v2754_v63 = vmul.f32 %v929_v19, %v2685_v4  ;;  %v2757_v15 = vmul.f32 %v931_v41, %v2687_v24  ;;  %v933_v23 = vadd.f32 1.0, %v1980_v59  ;;  %v815_v21 = vmul.f32 0.70710677, %v2746_v26 }
 0x159   : > { %v994_v57 = vmul.f32 %v930_v30, %v2694_v54  ;;  %v746_v36 = vmul.f32 0.5, %v568_v46  ;;  %v748_v5 = vmul.f32 0.5, %v681_v47  ;;  %v814_v10 = vmul.f32 0.70710677, %v2751_v29  ;;  %v2885_v54 = vld [vmem:[#allocation6_spill] sm:$0xff] }
 0x15a   : > { %v1984_v14 = vpop.eup %1983  ;;  %v996_v31 = vmul.f32 %v932_v40, %v2696_v45  ;;  %v2765_v43 = vadd.f32 %v2603_v7, %v2319_v35  ;;  %v1030_v4 = vpack.c.bf16 %v2709_v13, %v2680_v55  ;;  %v1032_v24 = vpack.c.bf16 %v988_v60, %v2683_v18 }
 0x15b   : > { %v1986_v38 = vpop.eup %1985  ;;  %v935_v25 = vadd.f32 1.0, %v1982_v61  ;;  %1995 = verf.f32 %v813_v42  ;;  %v576_v62 = vadd.f32 %v2885_v54, %v2313_v32  ;;  %v2774_v2 = vadd.f32 %v2610_v9, %v2315_v33 }
 0x15c   : > { %v1988_v45 = vpop.eup %1987  ;;  %v2777_v53 = vmul.f32 %v933_v23, %v2698_v0  ;;  %1997 = verf.f32 %v815_v21  ;;  %v816_v7 = vmul.f32 0.70710677, %v2765_v43  ;;  %1372 = vmatprep.mubr.bf16.mxu0 %v1030_v4  ;;  %1469 = vmatprep.mubr.bf16.mxu1 %v1032_v24  ;;  %v1029_v55 = vpack.c.bf16 %v2690_v51, %v2642_v50 }
 0x15d   : > { %v1990_v18 = vpop.eup %1989  ;;  %v934_v13 = vadd.f32 1.0, %v1984_v14  ;;  %v937_v60 = vadd.f32 1.0, %v1988_v45  ;;  %1999 = verf.f32 %v814_v10  ;;  %v817_v32 = vmul.f32 0.70710677, %v576_v62 }
 0x15e   : > { %v936_v8 = vadd.f32 1.0, %v1986_v38  ;;  %v939_v33 = vadd.f32 1.0, %v1990_v18  ;;  %2001 = verf.f32 %v816_v7  ;;  %v819_v9 = vmul.f32 0.70710677, %v2774_v2  ;;  %1373 = vmatmul.mubr.bf16.gmra.mrb[48].mxu0 %v1029_v55 }
 0x15f   : > { %v1001_v0 = vmul.f32 %v937_v60, %v745_v39  ;;  %2003 = verf.f32 %v817_v32  ;;  %v1031_v49 = vpack.c.bf16 %v2692_v48, %v2667_v28  ;;  %v578_v46 = vadd.f32 %v2612_v56, %v2317_v34 }
 0x160   : > { %v1992_v50 = vpop.eup %1991  ;;  %v2787_v51 = vmul.f32 %v939_v33, %v747_v16  ;;  %2005 = verf.f32 %v819_v9  ;;  %v691_v20 = vadd.f32 %v2621_v44, %v2319_v35  ;;  %v1034_v47 = vpack.c.bf16 %v994_v57, %v2737_v3 }
 0x161   : > { %v1994_v22 = vpop.eup %1993  ;;  %v999_v19 = vmul.f32 %v935_v25, %v2700_v37  ;;  %v938_v41 = vadd.f32 1.0, %v1992_v50  ;;  %1470 = vmatmul.mubr.bf16.gmra.mrb[48].mxu1 %v1031_v49  ;;  %v818_v11 = vmul.f32 0.70710677, %v578_v46  ;;  %v1036_v28 = vpack.c.bf16 %v996_v31, %v2740_v6 }
 0x162   : > { %v998_v48 = vmul.f32 %v934_v13, %v2720_v52  ;;  %v940_v34 = vadd.f32 1.0, %v1994_v22  ;;  %v820_v56 = vmul.f32 0.70710677, %v691_v20  ;;  %1380 = vmatprep.mubr.bf16.mxu0 %v1034_v47  ;;  %v1033_v59 = vpack.c.bf16 %v2754_v63, %v2727_v27 }
 0x163   : > { %v1000_v35 = vmul.f32 %v936_v8, %v2742_v17  ;;  %v1002_v44 = vmul.f32 %v938_v41, %v746_v36  ;;  %2007 = verf.f32 %v818_v11  ;;  %1477 = vmatprep.mubr.bf16.mxu1 %v1036_v28  ;;  %v1035_v37 = vpack.c.bf16 %v2757_v15, %v2730_v12 }
 0x164   : > { %v1004_v3 = vmul.f32 %v940_v34, %v748_v5  ;;  %2009 = verf.f32 %v820_v56  ;;  %v1037_v6 = vpack.c.bf16 %v1001_v0, %v2777_v53  ;;  %v1039_v52 = vpack.c.bf16 %v2787_v51, %v999_v19 }
 0x165   : > { %v1996_v30 = vpop.eup %1995  ;;  %v1038_v58 = vpack.c.bf16 %v1002_v44, %v998_v48  ;;  %v749_v12 = vmul.f32 0.5, %v2734_v1  ;;  %v753_v15 = vmul.f32 0.5, %v576_v62  ;;  %v751_v21 = vmul.f32 0.5, %v2746_v26  ;;  %v2011_v48 = vld [vmem:[%s2164_s30] sm:$0xff] }
 0x166   : > { %v1998_v40 = vpop.eup %1997  ;;  %1381 = vmatmul.mubr.bf16.gmra.mrb[52].mxu0 %v1033_v59  ;;  %v1040_v39 = vpack.c.bf16 %v1004_v3, %v1000_v35  ;;  %v941_v16 = vadd.f32 1.0, %v1996_v30  ;;  %v755_v57 = vmul.f32 0.5, %v2774_v2  ;;  %v750_v54 = vmul.f32 0.5, %v2751_v29  ;;  %v2012_v59 = vld [vmem:[%s2164_s30 + $0x8] sm:$0xff] }
 0x167   : > { %v2000_v27 = vpop.eup %1999  ;;  %1388 = vmatprep.mubr.bf16.mxu0 %v1038_v58  ;;  %v943_v61 = vadd.f32 1.0, %v1998_v40  ;;  %v754_v45 = vmul.f32 0.5, %v578_v46  ;;  %v752_v53 = vmul.f32 0.5, %v2765_v43  ;;  %v756_v26 = vmul.f32 0.5, %v691_v20  ;;  %v2810_v43 = vld [vmem:[%s2874_s4] ss:$0 sm:$0xff] }
 0x168   : > { %v2002_v17 = vpop.eup %2001  ;;  %v1005_v5 = vmul.f32 %v941_v16, %v749_v12  ;;  %v942_v10 = vadd.f32 1.0, %v2000_v27  ;;  %v2013_v12 = vld [vmem:[%s2164_s30 + $0x10] sm:$0xff] }
 0x169   : > { %v2004_v42 = vpop.eup %2003  ;;  %1478 = vmatmul.mubr.bf16.gmra.mrb[52].mxu1 %v1035_v37  ;;  %v1007_v4 = vmul.f32 %v943_v61, %v751_v21  ;;  %v944_v24 = vadd.f32 1.0, %v2002_v17  ;;  %v2014_v21 = vld [vmem:[%s2164_s30 + $0x18] sm:$0xff] }
 0x16a   : > { %v2006_v63 = vpop.eup %2005  ;;  %v945_v23 = vadd.f32 1.0, %v2004_v42  ;;  %1485 = vmatprep.mubr.bf16.mxu1 %v1040_v39  ;;  %v1006_v55 = vmul.f32 %v942_v10, %v750_v54 }
 0x16b   : > { %v947_v36 = vadd.f32 1.0, %v2006_v63  ;;  %v1008_v13 = vmul.f32 %v944_v24, %v752_v53 }
 0x16c   : > { %v1009_v14 = vmul.f32 %v945_v23, %v753_v15 }
 0x16d   : > { %v2008_v31 = vpop.eup %2007  ;;  %v1011_v38 = vmul.f32 %v947_v36, %v755_v57 }
 0x16e   : > { %v2010_v25 = vpop.eup %2009  ;;  %v946_v1 = vadd.f32 1.0, %v2008_v31  ;;  %1389 = vmatmul.mubr.bf16.gmra.mrb[56].mxu0 %v1037_v6  ;;  %v1041_v62 = vpack.c.bf16 %v1009_v14, %v1005_v5 }
 0x16f   : > { %v948_v7 = vadd.f32 1.0, %v2010_v25  ;;  %v1043_v2 = vpack.c.bf16 %v1011_v38, %v1007_v4 }
 0x170   : > { %v1010_v18 = vmul.f32 %v946_v1, %v754_v45 }
 0x171   : > { %v1012_v60 = vmul.f32 %v948_v7, %v756_v26  ;;  %1486 = vmatmul.mubr.bf16.gmra.mrb[56].mxu1 %v1039_v52  ;;  %v2015_v7 = vld [vmem:[%s2164_s30 + $0x20] sm:$0xff] }
 0x172   : > { %v1042_v32 = vpack.c.bf16 %v1010_v18, %v1006_v55  ;;  %v2016_v18 = vld [vmem:[%s2164_s30 + $0x28] sm:$0xff] }
 0x173   : > { %v1044_v8 = vpack.c.bf16 %v1012_v60, %v1008_v13 }
 0x174   : > { %1396 = vmatprep.mubr.bf16.mxu0 %v1042_v32 }
 0x175   : > { %1493 = vmatprep.mubr.bf16.mxu1 %v1044_v8 }
 0x176   : > { %1397 = vmatmul.mubr.bf16.gmra.mrb[60].mxu0 %v1041_v62 }
 0x179   : > { %1494 = vmatmul.mubr.bf16.gmra.mrb[60].mxu1 %v1043_v2 }
 0x1fa   : > { %v1682_v29 = vpop.f32.mrb[32].mxu0  ;;  %v1746_v33 = vpop.f32.mrb[32].mxu1 }
 0x1fb   : > { %v1683_v9 = vpop.f32.mrb[33].mxu0  ;;  %v1747_v0 = vpop.f32.mrb[33].mxu1 }
 0x1fc   : > { %v1684_v49 = vadd.f32 %v1683_v9, %v1682_v29  ;;  %v1748_v46 = vadd.f32 %v1747_v0, %v1746_v33  ;;  %v1685_v50 = vpop.f32.mrb[34].mxu0  ;;  %v1749_v51 = vpop.f32.mrb[34].mxu1 }
 0x1fd   : > { %v1686_v20 = vpop.f32.mrb[35].mxu0  ;;  %v1750_v47 = vpop.f32.mrb[35].mxu1 }
 0x1fe   : > { %v1343_v22 = vadd.f32 %v1684_v49, %v2810_v43  ;;  %v1687_v19 = vadd.f32 %v1686_v20, %v1685_v50  ;;  %v1751_v41 = vadd.f32 %v1750_v47, %v1749_v51 }
 0x200   : > { %v1440_v11 = vadd.f32 %v1748_v46, %v1343_v22  ;;  %v1346_v28 = vadd.f32 %v1687_v19, %v2810_v43 }
 0x202   : > { %v1502_v34 = vadd.f32 %v2011_v48, %v1440_v11  ;;  %v1443_v56 = vadd.f32 %v1751_v41, %v1346_v28  ;;  %v2017_v41 = vld [vmem:[%s2164_s30 + $0x30] sm:$0xff]  ;;  %v2018_v48 = vld [vmem:[%s2164_s30 + $0x38] sm:$0xff] }
 0x204   : > { %1518 = vst [vmem:[%s2819_s28] sm:$0xff] %v1502_v34  ;;  %v1503_v35 = vadd.f32 %v2012_v59, %v1443_v56 }
 0x206   : > { %1519 = vst [vmem:[%s2819_s28 + $0x8] sm:$0xff] %v1503_v35 }
 0x209   : > { %v1688_v44 = vpop.f32.mrb[36].mxu0 }
 0x20a   : > { %v1752_v37 = vpop.f32.mrb[36].mxu1  ;;  %v1689_v3 = vpop.f32.mrb[37].mxu0 }
 0x20b   : > { %v1753_v6 = vpop.f32.mrb[37].mxu1  ;;  %v1690_v52 = vadd.f32 %v1689_v3, %v1688_v44  ;;  %v1691_v58 = vpop.f32.mrb[38].mxu0 }
 0x20c   : > { %v1754_v30 = vadd.f32 %v1753_v6, %v1752_v37  ;;  %v1755_v40 = vpop.f32.mrb[38].mxu1  ;;  %v1692_v39 = vpop.f32.mrb[39].mxu0 }
 0x20d   : > { %v1756_v27 = vpop.f32.mrb[39].mxu1  ;;  %v1351_v17 = vadd.f32 %v1690_v52, %v2810_v43  ;;  %v1693_v16 = vadd.f32 %v1692_v39, %v1691_v58 }
 0x20e   : > { %v1757_v42 = vadd.f32 %v1756_v27, %v1755_v40 }
 0x20f   : > { %v1448_v61 = vadd.f32 %v1754_v30, %v1351_v17  ;;  %v1354_v63 = vadd.f32 %v1693_v16, %v2810_v43 }
 0x211   : > { %v1504_v15 = vadd.f32 %v2013_v12, %v1448_v61  ;;  %v1451_v23 = vadd.f32 %v1757_v42, %v1354_v63  ;;  %v2019_v61 = vld [vmem:[%s2164_s30 + $0x40] sm:$0xff] }
 0x213   : > { %1520 = vst [vmem:[%s2819_s28 + $0x10] sm:$0xff] %v1504_v15  ;;  %v1505_v57 = vadd.f32 %v2014_v21, %v1451_v23 }
 0x215   : > { %1521 = vst [vmem:[%s2819_s28 + $0x18] sm:$0xff] %v1505_v57  ;;  %v2020_v57 = vld [vmem:[%s2164_s30 + $0x48] sm:$0xff] }
 0x218   : > { %v1694_v36 = vpop.f32.mrb[40].mxu0  ;;  %v1758_v5 = vpop.f32.mrb[40].mxu1 }
 0x219   : > { %v1695_v10 = vpop.f32.mrb[41].mxu0  ;;  %v1759_v14 = vpop.f32.mrb[41].mxu1 }
 0x21a   : > { %v1696_v31 = vadd.f32 %v1695_v10, %v1694_v36  ;;  %v1760_v4 = vadd.f32 %v1759_v14, %v1758_v5  ;;  %v1697_v24 = vpop.f32.mrb[42].mxu0  ;;  %v1761_v38 = vpop.f32.mrb[42].mxu1 }
 0x21b   : > { %v1698_v25 = vpop.f32.mrb[43].mxu0  ;;  %v1762_v54 = vpop.f32.mrb[43].mxu1 }
 0x21c   : > { %v1359_v45 = vadd.f32 %v1696_v31, %v2810_v43  ;;  %v1699_v1 = vadd.f32 %v1698_v25, %v1697_v24  ;;  %v1763_v62 = vadd.f32 %v1762_v54, %v1761_v38 }
 0x21e   : > { %v1456_v53 = vadd.f32 %v1760_v4, %v1359_v45  ;;  %v1362_v26 = vadd.f32 %v1699_v1, %v2810_v43 }
 0x220   : > { %v1506_v2 = vadd.f32 %v2015_v7, %v1456_v53  ;;  %v1459_v55 = vadd.f32 %v1763_v62, %v1362_v26  ;;  %v2021_v53 = vld [vmem:[%s2164_s30 + $0x50] sm:$0xff] }
 0x222   : > { %1522 = vst [vmem:[%s2819_s28 + $0x20] sm:$0xff] %v1506_v2  ;;  %v1507_v13 = vadd.f32 %v2016_v18, %v1459_v55 }
 0x224   : > { %1523 = vst [vmem:[%s2819_s28 + $0x28] sm:$0xff] %v1507_v13  ;;  %v1700_v60 = vpop.f32.mrb[44].mxu0  ;;  %v2022_v13 = vld [vmem:[%s2164_s30 + $0x58] sm:$0xff] }
 0x225   : > { %v1764_v32 = vpop.f32.mrb[44].mxu1  ;;  %v1701_v8 = vpop.f32.mrb[45].mxu0 }
 0x226   : > { %v1702_v29 = vadd.f32 %v1701_v8, %v1700_v60  ;;  %v1765_v33 = vpop.f32.mrb[45].mxu1  ;;  %v1703_v9 = vpop.f32.mrb[46].mxu0 }
 0x227   : > { %v1766_v0 = vadd.f32 %v1765_v33, %v1764_v32  ;;  %v1767_v49 = vpop.f32.mrb[46].mxu1  ;;  %v1704_v46 = vpop.f32.mrb[47].mxu0 }
 0x228   : > { %v1367_v50 = vadd.f32 %v1702_v29, %v2810_v43  ;;  %v1705_v51 = vadd.f32 %v1704_v46, %v1703_v9  ;;  %v1768_v20 = vpop.f32.mrb[47].mxu1 }
 0x229   : > { %v1769_v47 = vadd.f32 %v1768_v20, %v1767_v49 }
 0x22a   : > { %v1464_v22 = vadd.f32 %v1766_v0, %v1367_v50  ;;  %v1370_v19 = vadd.f32 %v1705_v51, %v2810_v43 }
 0x22c   : > { %v1508_v11 = vadd.f32 %v2017_v41, %v1464_v22  ;;  %v1467_v28 = vadd.f32 %v1769_v47, %v1370_v19  ;;  %v2023_v22 = vld [vmem:[%s2164_s30 + $0x60] sm:$0xff] }
 0x22e   : > { %1524 = vst [vmem:[%s2819_s28 + $0x30] sm:$0xff] %v1508_v11  ;;  %v1509_v34 = vadd.f32 %v2018_v48, %v1467_v28 }
 0x230   : > { %1525 = vst [vmem:[%s2819_s28 + $0x38] sm:$0xff] %v1509_v34  ;;  %v2024_v34 = vld [vmem:[%s2164_s30 + $0x68] sm:$0xff] }
 0x231   : > { %v1706_v56 = vpop.f32.mrb[48].mxu0 }
 0x232   : > { %v1707_v59 = vpop.f32.mrb[49].mxu0 }
 0x233   : > { %v1708_v35 = vadd.f32 %v1707_v59, %v1706_v56  ;;  %v1709_v44 = vpop.f32.mrb[50].mxu0 }
 0x234   : > { %v1770_v37 = vpop.f32.mrb[48].mxu1  ;;  %v1710_v3 = vpop.f32.mrb[51].mxu0 }
 0x235   : > { %v1375_v6 = vadd.f32 %v1708_v35, %v2810_v43  ;;  %v1771_v52 = vpop.f32.mrb[49].mxu1  ;;  %v1711_v30 = vadd.f32 %v1710_v3, %v1709_v44 }
 0x236   : > { %v1772_v58 = vadd.f32 %v1771_v52, %v1770_v37  ;;  %v1773_v40 = vpop.f32.mrb[50].mxu1 }
 0x237   : > { %v1378_v39 = vadd.f32 %v1711_v30, %v2810_v43  ;;  %v1774_v27 = vpop.f32.mrb[51].mxu1 }
 0x238   : > { %v1472_v17 = vadd.f32 %v1772_v58, %v1375_v6  ;;  %v1775_v16 = vadd.f32 %v1774_v27, %v1773_v40  ;;  %v2025_v27 = vld [vmem:[%s2164_s30 + $0x70] sm:$0xff] }
 0x239   : > { %v1712_v42 = vpop.f32.mrb[52].mxu0 }
 0x23a   : > { %v1510_v63 = vadd.f32 %v2019_v61, %v1472_v17  ;;  %v1475_v12 = vadd.f32 %v1775_v16, %v1378_v39  ;;  %v1713_v15 = vpop.f32.mrb[53].mxu0 }
 0x23b   : > { %v1714_v23 = vadd.f32 %v1713_v15, %v1712_v42  ;;  %v1715_v21 = vpop.f32.mrb[54].mxu0  ;;  %v2026_v42 = vld [vmem:[%s2164_s30 + $0x78] sm:$0xff] }
 0x23c   : > { %1526 = vst [vmem:[%s2819_s28 + $0x40] sm:$0xff] %v1510_v63  ;;  %v1511_v36 = vadd.f32 %v2020_v57, %v1475_v12  ;;  %v1776_v5 = vpop.f32.mrb[52].mxu1  ;;  %v1716_v10 = vpop.f32.mrb[55].mxu0 }
 0x23d   : > { %v1383_v14 = vadd.f32 %v1714_v23, %v2810_v43  ;;  %v1777_v31 = vpop.f32.mrb[53].mxu1  ;;  %v1717_v4 = vadd.f32 %v1716_v10, %v1715_v21 }
 0x23e   : > { %1527 = vst [vmem:[%s2819_s28 + $0x48] sm:$0xff] %v1511_v36  ;;  %v1778_v24 = vadd.f32 %v1777_v31, %v1776_v5  ;;  %v1779_v38 = vpop.f32.mrb[54].mxu1 }
 0x23f   : > { %v1386_v25 = vadd.f32 %v1717_v4, %v2810_v43  ;;  %v1780_v54 = vpop.f32.mrb[55].mxu1 }
 0x240   : > { %v1480_v45 = vadd.f32 %v1778_v24, %v1383_v14  ;;  %v1781_v1 = vadd.f32 %v1780_v54, %v1779_v38 }
 0x241   : > { %v1718_v62 = vpop.f32.mrb[56].mxu0 }
 0x242   : > { %v1512_v26 = vadd.f32 %v2021_v53, %v1480_v45  ;;  %v1483_v7 = vadd.f32 %v1781_v1, %v1386_v25  ;;  %v1719_v2 = vpop.f32.mrb[57].mxu0 }
 0x243   : > { %v1720_v55 = vadd.f32 %v1719_v2, %v1718_v62  ;;  %v1721_v18 = vpop.f32.mrb[58].mxu0 }
 0x244   : > { %1528 = vst [vmem:[%s2819_s28 + $0x50] sm:$0xff] %v1512_v26  ;;  %v1513_v60 = vadd.f32 %v2022_v13, %v1483_v7  ;;  %v1782_v32 = vpop.f32.mrb[56].mxu1  ;;  %v1722_v8 = vpop.f32.mrb[59].mxu0 }
 0x245   : > { %v1391_v29 = vadd.f32 %v1720_v55, %v2810_v43  ;;  %v1783_v33 = vpop.f32.mrb[57].mxu1  ;;  %v1723_v9 = vadd.f32 %v1722_v8, %v1721_v18 }
 0x246   : > { %1529 = vst [vmem:[%s2819_s28 + $0x58] sm:$0xff] %v1513_v60  ;;  %v1784_v0 = vadd.f32 %v1783_v33, %v1782_v32  ;;  %v1785_v49 = vpop.f32.mrb[58].mxu1 }
 0x247   : > { %v1394_v46 = vadd.f32 %v1723_v9, %v2810_v43  ;;  %v1786_v50 = vpop.f32.mrb[59].mxu1 }
 0x248   : > { %v1488_v51 = vadd.f32 %v1784_v0, %v1391_v29  ;;  %v1787_v20 = vadd.f32 %v1786_v50, %v1785_v49 }
 0x249   : > { %v1724_v47 = vpop.f32.mrb[60].mxu0 }
 0x24a   : > { %v1514_v19 = vadd.f32 %v2023_v22, %v1488_v51  ;;  %v1491_v41 = vadd.f32 %v1787_v20, %v1394_v46  ;;  %v1725_v11 = vpop.f32.mrb[61].mxu0 }
 0x24b   : > { %v1726_v28 = vadd.f32 %v1725_v11, %v1724_v47  ;;  %v1727_v48 = vpop.f32.mrb[62].mxu0 }
 0x24c   : > { %1530 = vst [vmem:[%s2819_s28 + $0x60] sm:$0xff] %v1514_v19  ;;  %v1515_v56 = vadd.f32 %v2024_v34, %v1491_v41  ;;  %v1788_v59 = vpop.f32.mrb[60].mxu1  ;;  %v1728_v35 = vpop.f32.mrb[63].mxu0 }
 0x24d   : > { %v1399_v44 = vadd.f32 %v1726_v28, %v2810_v43  ;;  %v1789_v37 = vpop.f32.mrb[61].mxu1  ;;  %v1729_v3 = vadd.f32 %v1728_v35, %v1727_v48 }
 0x24e   : > { %1531 = vst [vmem:[%s2819_s28 + $0x68] sm:$0xff] %v1515_v56  ;;  %v1790_v6 = vadd.f32 %v1789_v37, %v1788_v59  ;;  %v1791_v52 = vpop.f32.mrb[62].mxu1 }
 0x24f   : > { %v1402_v30 = vadd.f32 %v1729_v3, %v2810_v43  ;;  %v1792_v58 = vpop.f32.mrb[63].mxu1 }
 0x250   : > { %v1496_v40 = vadd.f32 %v1790_v6, %v1399_v44  ;;  %v1793_v39 = vadd.f32 %v1792_v58, %v1791_v52 }
 0x252   : > { %v1516_v17 = vadd.f32 %v2025_v27, %v1496_v40  ;;  %v1499_v16 = vadd.f32 %v1793_v39, %v1402_v30 }
 0x254   : > { %1532 = vst [vmem:[%s2819_s28 + $0x70] sm:$0xff] %v1516_v17  ;;  %v1517_v61 = vadd.f32 %v2026_v42, %v1499_v16 }
 0x256   : > { %1533 = vst [vmem:[%s2819_s28 + $0x78] sm:$0xff] %v1517_v61 }
 0x257 PF: > { %s15_s18 = sadd.s32 1, %s2033_s18  }
 0x258   : > { %p12_p4 = scmp.ge.s32.totalorder %s15_s18, 4  }
 0x25a   :  { %14 = sbr.rel (!%p12_p4) target bundleno = 1 (0x1), region = 70 }

</bundles_post_ra>
